<compile_context>
chip_gen: v7x
topology: tpu7x:2x2x1
jax: 0.10.0
libtpu: 0.0.40
codegen_flags: <defaults>
</compile_context>

<pallas_src>
import functools

import jax
import jax.numpy as jnp
from jax import lax
from jax.experimental import pallas as pl
from jax.experimental.pallas import tpu as pltpu

LANE = 128  # lane-pad every feature dimension to this


# ---------------------------------------------------------------------------
# Fused kernel: single invocation, all operands VMEM-resident.
#   h <- relu( A_hat @ (h @ W_l) + b_l )   for l = 0 .. L-2   (unrolled loop)
#   o <-        A_hat @ (h @ W_L-1) + b_L-1                    (peeled, no relu)
# ---------------------------------------------------------------------------
def _fused_gcn_kernel(a_ref, x_ref, w_ref, b_ref, o_ref, *, num_layers):
    a = a_ref[...]                             # (n, n) bf16, held once
    h0 = x_ref[...].astype(jnp.float32)        # (n, 128) f32 activation carry

    def layer(l, h):
        # Two chained MXU matmuls, bf16 operands, f32 accumulation.
        hw = jnp.dot(h.astype(jnp.bfloat16), w_ref[l],
                     preferred_element_type=jnp.float32)
        return jnp.dot(a, hw.astype(jnp.bfloat16),
                       preferred_element_type=jnp.float32) + b_ref[l]

    # Hidden layers (always relu), fully unrolled -> straight-line body.
    h = lax.fori_loop(
        0, num_layers - 1,
        lambda l, h: jnp.maximum(layer(l, h), 0.0),
        h0,
        unroll=True,
    )

    # Peeled final layer: no relu, single lane-dense (128-wide) store.
    o_ref[...] = layer(num_layers - 1, h).astype(o_ref.dtype)


def fused_gcn(a_hat, x_pad, w_all, b_all):
    n, p = x_pad.shape
    num_layers = w_all.shape[0]
    kern = functools.partial(_fused_gcn_kernel, num_layers=num_layers)
    vmem = pl.BlockSpec(memory_space=pltpu.MemorySpace.VMEM)  # whole array in VMEM
    return pl.pallas_call(
        kern,
        out_shape=jax.ShapeDtypeStruct((n, p), jnp.float32),
        in_specs=[vmem, vmem, vmem, vmem],   # A_hat, x, W_all, b_all all resident
        out_specs=vmem,
    )(a_hat, x_pad, w_all, b_all)


# ---------------------------------------------------------------------------
# Glue: normalized adjacency from edge_index (GCN normalization w/ self loops).
# Computed ONCE per graph, outside the kernel, and reused across layers/calls.
# NOTE: duplicate edges accumulate (scatter-add), matching PyG's per-edge sum.
# ---------------------------------------------------------------------------
def build_norm_adj(edge_index, num_nodes):
    src = edge_index[0]
    dst = edge_index[1]
    loop = jnp.arange(num_nodes, dtype=edge_index.dtype)
    src = jnp.concatenate([src, loop])
    dst = jnp.concatenate([dst, loop])
    # A[i, j] = 1 if there is an edge j -> i (messages flow source -> target)
    a = jnp.zeros((num_nodes, num_nodes), jnp.float32).at[dst, src].add(1.0)
    deg = a.sum(axis=1)
    dinv = jnp.where(deg > 0, 1.0 / jnp.sqrt(deg), 0.0)
    return dinv[:, None] * a * dinv[None, :]


# ---------------------------------------------------------------------------
# Parameter construction (deterministic glorot-uniform weights, zero bias),
# plus stacking into uniform lane-padded [L,128,128] bf16 / [L,1,128] f32.
# Zero padding + relu(0)=0 keeps padded columns exactly zero layer-to-layer.
# ---------------------------------------------------------------------------
def init_params(key, input_dim, hidden_dim, output_dim, layer_num):
    dims = [input_dim] + [hidden_dim] * (layer_num - 1) + [output_dim]
    params = []
    for i in range(layer_num):
        key, wk = jax.random.split(key)
        fan_in, fan_out = dims[i], dims[i + 1]
        limit = jnp.sqrt(6.0 / (fan_in + fan_out))
        w = jax.random.uniform(wk, (fan_in, fan_out), jnp.float32, -limit, limit)
        b = jnp.zeros((1, fan_out), jnp.float32)
        params.append((w, b))
    return params


def stack_params(params, pad_dim=LANE):
    ws, bs = [], []
    for w, b in params:
        fan_in, fan_out = w.shape
        ws.append(jnp.pad(w, ((0, pad_dim - fan_in), (0, pad_dim - fan_out))))
        bs.append(jnp.pad(b.reshape(1, -1), ((0, 0), (0, pad_dim - fan_out))))
    w_all = jnp.stack(ws).astype(jnp.bfloat16)   # [L, 128, 128] bf16 (MXU-native)
    b_all = jnp.stack(bs)                        # [L, 1, 128]  f32
    return w_all, b_all


@functools.partial(jax.jit, static_argnames=("output_dim",))
def detection_gcn_forward(x, a_hat_bf16, w_all, b_all, *, output_dim):
    n, f = x.shape
    p = w_all.shape[-1]
    x_pad = jnp.zeros((n, p), jnp.float32).at[:, :f].set(x)
    out = fused_gcn(a_hat_bf16, x_pad, w_all, b_all)
    return out[:, :output_dim]


# Pure-JAX reference for sanity checking the fused kernel path (f32 math).
def detection_gcn_reference(x, a_hat, params):
    h = x
    for w, b in params[:-1]:
        h = jnp.maximum(a_hat @ (h @ w) + b, 0.0)
    w, b = params[-1]
    return a_hat @ (h @ w) + b


if __name__ == "__main__":
    num_nodes = 16
    input_dim, hidden_dim, output_dim = 8, 32, 4
    layer_num = 20

    key = jax.random.PRNGKey(0)
    key, xk = jax.random.split(key)
    x = jax.random.normal(xk, (num_nodes, input_dim), jnp.float32)

    # Undirected ring graph: edges i <-> (i+1) mod N, edge_index shape [2, 2N]
    i = jnp.arange(num_nodes, dtype=jnp.int32)
    j = (i + 1) % num_nodes
    edge_index = jnp.stack(
        [jnp.concatenate([i, j]), jnp.concatenate([j, i])], axis=0
    )

    params = init_params(key, input_dim, hidden_dim, output_dim, layer_num)

    # Precompute once (hoisted out of the forward pass): graph-constant A_hat
    # and the stacked, lane-padded, bf16 parameter tensors.
    a_hat = build_norm_adj(edge_index, num_nodes)
    a_hat_bf16 = a_hat.astype(jnp.bfloat16)
    w_all, b_all = stack_params(params)

    out = detection_gcn_forward(x, a_hat_bf16, w_all, b_all, output_dim=output_dim)
    out = jax.block_until_ready(out)

    # Reference uses f32 math on the exact bf16-quantized operands the kernel
    # consumes; remaining difference is per-layer bf16 activation rounding, so
    # the tolerance is loosened accordingly (bf16 MXU path).
    a_q = a_hat_bf16.astype(jnp.float32)
    params_q = [(w.astype(jnp.bfloat16).astype(jnp.float32), b) for w, b in params]
    ref = detection_gcn_reference(x, a_q, params_q)

    assert out.shape == (num_nodes, output_dim)
    max_err = float(jnp.max(jnp.abs(out - ref)))
    assert jnp.allclose(out, ref, atol=5e-2, rtol=5e-2), max_err

    print("KERNEL_OK")
</pallas_src>

<mosaic_0001>
module attributes {stable_mosaic.version = 11 : i64} {
  func.func @_fused_gcn_kernel(%arg0: memref<16x16xbf16, #tpu.memory_space<vmem>>, %arg1: memref<16x128xf32, #tpu.memory_space<vmem>>, %arg2: memref<20x128x128xbf16, #tpu.memory_space<vmem>>, %arg3: memref<20x1x128xf32, #tpu.memory_space<vmem>>, %arg4: memref<16x128xf32, #tpu.memory_space<vmem>>) attributes {dimension_semantics = [], scalar_prefetch = 0 : i64, scratch_operands = 0 : i64, tpu.core_type = #tpu.core_type<tc>} {
    %c0 = arith.constant 0 : index
    %c0_0 = arith.constant 0 : index
    %0 = vector.load %arg0[%c0, %c0_0] : memref<16x16xbf16, #tpu.memory_space<vmem>>, vector<16x16xbf16>
    %c0_1 = arith.constant 0 : index
    %c0_2 = arith.constant 0 : index
    %1 = vector.load %arg1[%c0_1, %c0_2] : memref<16x128xf32, #tpu.memory_space<vmem>>, vector<16x128xf32>
    %c0_i32 = arith.constant 0 : i32
    %2 = arith.truncf %1 : vector<16x128xf32> to vector<16x128xbf16>
    %3 = arith.index_cast %c0_i32 : i32 to index
    %c0_3 = arith.constant 0 : index
    %c0_4 = arith.constant 0 : index
    %4 = vector.load %arg2[%3, %c0_3, %c0_4] : memref<20x128x128xbf16, #tpu.memory_space<vmem>>, vector<1x128x128xbf16>
    %5 = vector.shape_cast %4 : vector<1x128x128xbf16> to vector<128x128xbf16>
    %cst = arith.constant dense<0.000000e+00> : vector<16x128xf32>
    %6 = tpu.matmul %2, %5, %cst {dimension_numbers = #tpu.dot_dimension_numbers<[1], [0], [0], [1], [0, 0, 1, 1], [], []>} : vector<16x128xbf16>, vector<128x128xbf16>, vector<16x128xf32> -> vector<16x128xf32>
    %7 = arith.truncf %6 : vector<16x128xf32> to vector<16x128xbf16>
    %cst_5 = arith.constant dense<0.000000e+00> : vector<16x128xf32>
    %8 = tpu.matmul %0, %7, %cst_5 {dimension_numbers = #tpu.dot_dimension_numbers<[1], [0], [0], [1], [0, 0, 1, 1], [], []>} : vector<16x16xbf16>, vector<16x128xbf16>, vector<16x128xf32> -> vector<16x128xf32>
    %9 = arith.index_cast %c0_i32 : i32 to index
    %c0_6 = arith.constant 0 : index
    %c0_7 = arith.constant 0 : index
    %10 = vector.load %arg3[%9, %c0_6, %c0_7] : memref<20x1x128xf32, #tpu.memory_space<vmem>>, vector<1x1x128xf32>
    %11 = vector.shape_cast %10 : vector<1x1x128xf32> to vector<1x128xf32>
    %12 = vector.broadcast %11 : vector<1x128xf32> to vector<16x128xf32>
    %13 = arith.addf %8, %12 : vector<16x128xf32>
    %cst_8 = arith.constant 0.000000e+00 : f32
    %14 = vector.broadcast %cst_8 : f32 to vector<16x128xf32>
    %15 = arith.maximumf %13, %14 : vector<16x128xf32>
    %c1_i32 = arith.constant 1 : i32
    %16 = arith.truncf %15 : vector<16x128xf32> to vector<16x128xbf16>
    %17 = arith.index_cast %c1_i32 : i32 to index
    %c0_9 = arith.constant 0 : index
    %c0_10 = arith.constant 0 : index
    %18 = vector.load %arg2[%17, %c0_9, %c0_10] : memref<20x128x128xbf16, #tpu.memory_space<vmem>>, vector<1x128x128xbf16>
    %19 = vector.shape_cast %18 : vector<1x128x128xbf16> to vector<128x128xbf16>
    %cst_11 = arith.constant dense<0.000000e+00> : vector<16x128xf32>
    %20 = tpu.matmul %16, %19, %cst_11 {dimension_numbers = #tpu.dot_dimension_numbers<[1], [0], [0], [1], [0, 0, 1, 1], [], []>} : vector<16x128xbf16>, vector<128x128xbf16>, vector<16x128xf32> -> vector<16x128xf32>
    %21 = arith.truncf %20 : vector<16x128xf32> to vector<16x128xbf16>
    %cst_12 = arith.constant dense<0.000000e+00> : vector<16x128xf32>
    %22 = tpu.matmul %0, %21, %cst_12 {dimension_numbers = #tpu.dot_dimension_numbers<[1], [0], [0], [1], [0, 0, 1, 1], [], []>} : vector<16x16xbf16>, vector<16x128xbf16>, vector<16x128xf32> -> vector<16x128xf32>
    %23 = arith.index_cast %c1_i32 : i32 to index
    %c0_13 = arith.constant 0 : index
    %c0_14 = arith.constant 0 : index
    %24 = vector.load %arg3[%23, %c0_13, %c0_14] : memref<20x1x128xf32, #tpu.memory_space<vmem>>, vector<1x1x128xf32>
    %25 = vector.shape_cast %24 : vector<1x1x128xf32> to vector<1x128xf32>
    %26 = vector.broadcast %25 : vector<1x128xf32> to vector<16x128xf32>
    %27 = arith.addf %22, %26 : vector<16x128xf32>
    %cst_15 = arith.constant 0.000000e+00 : f32
    %28 = vector.broadcast %cst_15 : f32 to vector<16x128xf32>
    %29 = arith.maximumf %27, %28 : vector<16x128xf32>
    %c2_i32 = arith.constant 2 : i32
    %30 = arith.truncf %29 : vector<16x128xf32> to vector<16x128xbf16>
    %31 = arith.index_cast %c2_i32 : i32 to index
    %c0_16 = arith.constant 0 : index
    %c0_17 = arith.constant 0 : index
    %32 = vector.load %arg2[%31, %c0_16, %c0_17] : memref<20x128x128xbf16, #tpu.memory_space<vmem>>, vector<1x128x128xbf16>
    %33 = vector.shape_cast %32 : vector<1x128x128xbf16> to vector<128x128xbf16>
    %cst_18 = arith.constant dense<0.000000e+00> : vector<16x128xf32>
    %34 = tpu.matmul %30, %33, %cst_18 {dimension_numbers = #tpu.dot_dimension_numbers<[1], [0], [0], [1], [0, 0, 1, 1], [], []>} : vector<16x128xbf16>, vector<128x128xbf16>, vector<16x128xf32> -> vector<16x128xf32>
    %35 = arith.truncf %34 : vector<16x128xf32> to vector<16x128xbf16>
    %cst_19 = arith.constant dense<0.000000e+00> : vector<16x128xf32>
    %36 = tpu.matmul %0, %35, %cst_19 {dimension_numbers = #tpu.dot_dimension_numbers<[1], [0], [0], [1], [0, 0, 1, 1], [], []>} : vector<16x16xbf16>, vector<16x128xbf16>, vector<16x128xf32> -> vector<16x128xf32>
    %37 = arith.index_cast %c2_i32 : i32 to index
    %c0_20 = arith.constant 0 : index
    %c0_21 = arith.constant 0 : index
    %38 = vector.load %arg3[%37, %c0_20, %c0_21] : memref<20x1x128xf32, #tpu.memory_space<vmem>>, vector<1x1x128xf32>
    %39 = vector.shape_cast %38 : vector<1x1x128xf32> to vector<1x128xf32>
    %40 = vector.broadcast %39 : vector<1x128xf32> to vector<16x128xf32>
    %41 = arith.addf %36, %40 : vector<16x128xf32>
    %cst_22 = arith.constant 0.000000e+00 : f32
    %42 = vector.broadcast %cst_22 : f32 to vector<16x128xf32>
    %43 = arith.maximumf %41, %42 : vector<16x128xf32>
    %c3_i32 = arith.constant 3 : i32
    %44 = arith.truncf %43 : vector<16x128xf32> to vector<16x128xbf16>
    %45 = arith.index_cast %c3_i32 : i32 to index
    %c0_23 = arith.constant 0 : index
    %c0_24 = arith.constant 0 : index
    %46 = vector.load %arg2[%45, %c0_23, %c0_24] : memref<20x128x128xbf16, #tpu.memory_space<vmem>>, vector<1x128x128xbf16>
    %47 = vector.shape_cast %46 : vector<1x128x128xbf16> to vector<128x128xbf16>
    %cst_25 = arith.constant dense<0.000000e+00> : vector<16x128xf32>
    %48 = tpu.matmul %44, %47, %cst_25 {dimension_numbers = #tpu.dot_dimension_numbers<[1], [0], [0], [1], [0, 0, 1, 1], [], []>} : vector<16x128xbf16>, vector<128x128xbf16>, vector<16x128xf32> -> vector<16x128xf32>
    %49 = arith.truncf %48 : vector<16x128xf32> to vector<16x128xbf16>
    %cst_26 = arith.constant dense<0.000000e+00> : vector<16x128xf32>
    %50 = tpu.matmul %0, %49, %cst_26 {dimension_numbers = #tpu.dot_dimension_numbers<[1], [0], [0], [1], [0, 0, 1, 1], [], []>} : vector<16x16xbf16>, vector<16x128xbf16>, vector<16x128xf32> -> vector<16x128xf32>
    %51 = arith.index_cast %c3_i32 : i32 to index
    %c0_27 = arith.constant 0 : index
    %c0_28 = arith.constant 0 : index
    %52 = vector.load %arg3[%51, %c0_27, %c0_28] : memref<20x1x128xf32, #tpu.memory_space<vmem>>, vector<1x1x128xf32>
    %53 = vector.shape_cast %52 : vector<1x1x128xf32> to vector<1x128xf32>
    %54 = vector.broadcast %53 : vector<1x128xf32> to vector<16x128xf32>
    %55 = arith.addf %50, %54 : vector<16x128xf32>
    %cst_29 = arith.constant 0.000000e+00 : f32
    %56 = vector.broadcast %cst_29 : f32 to vector<16x128xf32>
    %57 = arith.maximumf %55, %56 : vector<16x128xf32>
    %c4_i32 = arith.constant 4 : i32
    %58 = arith.truncf %57 : vector<16x128xf32> to vector<16x128xbf16>
    %59 = arith.index_cast %c4_i32 : i32 to index
    %c0_30 = arith.constant 0 : index
    %c0_31 = arith.constant 0 : index
    %60 = vector.load %arg2[%59, %c0_30, %c0_31] : memref<20x128x128xbf16, #tpu.memory_space<vmem>>, vector<1x128x128xbf16>
    %61 = vector.shape_cast %60 : vector<1x128x128xbf16> to vector<128x128xbf16>
    %cst_32 = arith.constant dense<0.000000e+00> : vector<16x128xf32>
    %62 = tpu.matmul %58, %61, %cst_32 {dimension_numbers = #tpu.dot_dimension_numbers<[1], [0], [0], [1], [0, 0, 1, 1], [], []>} : vector<16x128xbf16>, vector<128x128xbf16>, vector<16x128xf32> -> vector<16x128xf32>
    %63 = arith.truncf %62 : vector<16x128xf32> to vector<16x128xbf16>
    %cst_33 = arith.constant dense<0.000000e+00> : vector<16x128xf32>
    %64 = tpu.matmul %0, %63, %cst_33 {dimension_numbers = #tpu.dot_dimension_numbers<[1], [0], [0], [1], [0, 0, 1, 1], [], []>} : vector<16x16xbf16>, vector<16x128xbf16>, vector<16x128xf32> -> vector<16x128xf32>
    %65 = arith.index_cast %c4_i32 : i32 to index
    %c0_34 = arith.constant 0 : index
    %c0_35 = arith.constant 0 : index
    %66 = vector.load %arg3[%65, %c0_34, %c0_35] : memref<20x1x128xf32, #tpu.memory_space<vmem>>, vector<1x1x128xf32>
    %67 = vector.shape_cast %66 : vector<1x1x128xf32> to vector<1x128xf32>
    %68 = vector.broadcast %67 : vector<1x128xf32> to vector<16x128xf32>
    %69 = arith.addf %64, %68 : vector<16x128xf32>
    %cst_36 = arith.constant 0.000000e+00 : f32
    %70 = vector.broadcast %cst_36 : f32 to vector<16x128xf32>
    %71 = arith.maximumf %69, %70 : vector<16x128xf32>
    %c5_i32 = arith.constant 5 : i32
    %72 = arith.truncf %71 : vector<16x128xf32> to vector<16x128xbf16>
    %73 = arith.index_cast %c5_i32 : i32 to index
    %c0_37 = arith.constant 0 : index
    %c0_38 = arith.constant 0 : index
    %74 = vector.load %arg2[%73, %c0_37, %c0_38] : memref<20x128x128xbf16, #tpu.memory_space<vmem>>, vector<1x128x128xbf16>
    %75 = vector.shape_cast %74 : vector<1x128x128xbf16> to vector<128x128xbf16>
    %cst_39 = arith.constant dense<0.000000e+00> : vector<16x128xf32>
    %76 = tpu.matmul %72, %75, %cst_39 {dimension_numbers = #tpu.dot_dimension_numbers<[1], [0], [0], [1], [0, 0, 1, 1], [], []>} : vector<16x128xbf16>, vector<128x128xbf16>, vector<16x128xf32> -> vector<16x128xf32>
    %77 = arith.truncf %76 : vector<16x128xf32> to vector<16x128xbf16>
    %cst_40 = arith.constant dense<0.000000e+00> : vector<16x128xf32>
    %78 = tpu.matmul %0, %77, %cst_40 {dimension_numbers = #tpu.dot_dimension_numbers<[1], [0], [0], [1], [0, 0, 1, 1], [], []>} : vector<16x16xbf16>, vector<16x128xbf16>, vector<16x128xf32> -> vector<16x128xf32>
    %79 = arith.index_cast %c5_i32 : i32 to index
    %c0_41 = arith.constant 0 : index
    %c0_42 = arith.constant 0 : index
    %80 = vector.load %arg3[%79, %c0_41, %c0_42] : memref<20x1x128xf32, #tpu.memory_space<vmem>>, vector<1x1x128xf32>
    %81 = vector.shape_cast %80 : vector<1x1x128xf32> to vector<1x128xf32>
    %82 = vector.broadcast %81 : vector<1x128xf32> to vector<16x128xf32>
    %83 = arith.addf %78, %82 : vector<16x128xf32>
    %cst_43 = arith.constant 0.000000e+00 : f32
    %84 = vector.broadcast %cst_43 : f32 to vector<16x128xf32>
    %85 = arith.maximumf %83, %84 : vector<16x128xf32>
    %c6_i32 = arith.constant 6 : i32
    %86 = arith.truncf %85 : vector<16x128xf32> to vector<16x128xbf16>
    %87 = arith.index_cast %c6_i32 : i32 to index
    %c0_44 = arith.constant 0 : index
    %c0_45 = arith.constant 0 : index
    %88 = vector.load %arg2[%87, %c0_44, %c0_45] : memref<20x128x128xbf16, #tpu.memory_space<vmem>>, vector<1x128x128xbf16>
    %89 = vector.shape_cast %88 : vector<1x128x128xbf16> to vector<128x128xbf16>
    %cst_46 = arith.constant dense<0.000000e+00> : vector<16x128xf32>
    %90 = tpu.matmul %86, %89, %cst_46 {dimension_numbers = #tpu.dot_dimension_numbers<[1], [0], [0], [1], [0, 0, 1, 1], [], []>} : vector<16x128xbf16>, vector<128x128xbf16>, vector<16x128xf32> -> vector<16x128xf32>
    %91 = arith.truncf %90 : vector<16x128xf32> to vector<16x128xbf16>
    %cst_47 = arith.constant dense<0.000000e+00> : vector<16x128xf32>
    %92 = tpu.matmul %0, %91, %cst_47 {dimension_numbers = #tpu.dot_dimension_numbers<[1], [0], [0], [1], [0, 0, 1, 1], [], []>} : vector<16x16xbf16>, vector<16x128xbf16>, vector<16x128xf32> -> vector<16x128xf32>
    %93 = arith.index_cast %c6_i32 : i32 to index
    %c0_48 = arith.constant 0 : index
    %c0_49 = arith.constant 0 : index
    %94 = vector.load %arg3[%93, %c0_48, %c0_49] : memref<20x1x128xf32, #tpu.memory_space<vmem>>, vector<1x1x128xf32>
    %95 = vector.shape_cast %94 : vector<1x1x128xf32> to vector<1x128xf32>
    %96 = vector.broadcast %95 : vector<1x128xf32> to vector<16x128xf32>
    %97 = arith.addf %92, %96 : vector<16x128xf32>
    %cst_50 = arith.constant 0.000000e+00 : f32
    %98 = vector.broadcast %cst_50 : f32 to vector<16x128xf32>
    %99 = arith.maximumf %97, %98 : vector<16x128xf32>
    %c7_i32 = arith.constant 7 : i32
    %100 = arith.truncf %99 : vector<16x128xf32> to vector<16x128xbf16>
    %101 = arith.index_cast %c7_i32 : i32 to index
    %c0_51 = arith.constant 0 : index
    %c0_52 = arith.constant 0 : index
    %102 = vector.load %arg2[%101, %c0_51, %c0_52] : memref<20x128x128xbf16, #tpu.memory_space<vmem>>, vector<1x128x128xbf16>
    %103 = vector.shape_cast %102 : vector<1x128x128xbf16> to vector<128x128xbf16>
    %cst_53 = arith.constant dense<0.000000e+00> : vector<16x128xf32>
    %104 = tpu.matmul %100, %103, %cst_53 {dimension_numbers = #tpu.dot_dimension_numbers<[1], [0], [0], [1], [0, 0, 1, 1], [], []>} : vector<16x128xbf16>, vector<128x128xbf16>, vector<16x128xf32> -> vector<16x128xf32>
    %105 = arith.truncf %104 : vector<16x128xf32> to vector<16x128xbf16>
    %cst_54 = arith.constant dense<0.000000e+00> : vector<16x128xf32>
    %106 = tpu.matmul %0, %105, %cst_54 {dimension_numbers = #tpu.dot_dimension_numbers<[1], [0], [0], [1], [0, 0, 1, 1], [], []>} : vector<16x16xbf16>, vector<16x128xbf16>, vector<16x128xf32> -> vector<16x128xf32>
    %107 = arith.index_cast %c7_i32 : i32 to index
    %c0_55 = arith.constant 0 : index
    %c0_56 = arith.constant 0 : index
    %108 = vector.load %arg3[%107, %c0_55, %c0_56] : memref<20x1x128xf32, #tpu.memory_space<vmem>>, vector<1x1x128xf32>
    %109 = vector.shape_cast %108 : vector<1x1x128xf32> to vector<1x128xf32>
    %110 = vector.broadcast %109 : vector<1x128xf32> to vector<16x128xf32>
    %111 = arith.addf %106, %110 : vector<16x128xf32>
    %cst_57 = arith.constant 0.000000e+00 : f32
    %112 = vector.broadcast %cst_57 : f32 to vector<16x128xf32>
    %113 = arith.maximumf %111, %112 : vector<16x128xf32>
    %c8_i32 = arith.constant 8 : i32
    %114 = arith.truncf %113 : vector<16x128xf32> to vector<16x128xbf16>
    %115 = arith.index_cast %c8_i32 : i32 to index
    %c0_58 = arith.constant 0 : index
    %c0_59 = arith.constant 0 : index
    %116 = vector.load %arg2[%115, %c0_58, %c0_59] : memref<20x128x128xbf16, #tpu.memory_space<vmem>>, vector<1x128x128xbf16>
    %117 = vector.shape_cast %116 : vector<1x128x128xbf16> to vector<128x128xbf16>
    %cst_60 = arith.constant dense<0.000000e+00> : vector<16x128xf32>
    %118 = tpu.matmul %114, %117, %cst_60 {dimension_numbers = #tpu.dot_dimension_numbers<[1], [0], [0], [1], [0, 0, 1, 1], [], []>} : vector<16x128xbf16>, vector<128x128xbf16>, vector<16x128xf32> -> vector<16x128xf32>
    %119 = arith.truncf %118 : vector<16x128xf32> to vector<16x128xbf16>
    %cst_61 = arith.constant dense<0.000000e+00> : vector<16x128xf32>
    %120 = tpu.matmul %0, %119, %cst_61 {dimension_numbers = #tpu.dot_dimension_numbers<[1], [0], [0], [1], [0, 0, 1, 1], [], []>} : vector<16x16xbf16>, vector<16x128xbf16>, vector<16x128xf32> -> vector<16x128xf32>
    %121 = arith.index_cast %c8_i32 : i32 to index
    %c0_62 = arith.constant 0 : index
    %c0_63 = arith.constant 0 : index
    %122 = vector.load %arg3[%121, %c0_62, %c0_63] : memref<20x1x128xf32, #tpu.memory_space<vmem>>, vector<1x1x128xf32>
    %123 = vector.shape_cast %122 : vector<1x1x128xf32> to vector<1x128xf32>
    %124 = vector.broadcast %123 : vector<1x128xf32> to vector<16x128xf32>
    %125 = arith.addf %120, %124 : vector<16x128xf32>
    %cst_64 = arith.constant 0.000000e+00 : f32
    %126 = vector.broadcast %cst_64 : f32 to vector<16x128xf32>
    %127 = arith.maximumf %125, %126 : vector<16x128xf32>
    %c9_i32 = arith.constant 9 : i32
    %128 = arith.truncf %127 : vector<16x128xf32> to vector<16x128xbf16>
    %129 = arith.index_cast %c9_i32 : i32 to index
    %c0_65 = arith.constant 0 : index
    %c0_66 = arith.constant 0 : index
    %130 = vector.load %arg2[%129, %c0_65, %c0_66] : memref<20x128x128xbf16, #tpu.memory_space<vmem>>, vector<1x128x128xbf16>
    %131 = vector.shape_cast %130 : vector<1x128x128xbf16> to vector<128x128xbf16>
    %cst_67 = arith.constant dense<0.000000e+00> : vector<16x128xf32>
    %132 = tpu.matmul %128, %131, %cst_67 {dimension_numbers = #tpu.dot_dimension_numbers<[1], [0], [0], [1], [0, 0, 1, 1], [], []>} : vector<16x128xbf16>, vector<128x128xbf16>, vector<16x128xf32> -> vector<16x128xf32>
    %133 = arith.truncf %132 : vector<16x128xf32> to vector<16x128xbf16>
    %cst_68 = arith.constant dense<0.000000e+00> : vector<16x128xf32>
    %134 = tpu.matmul %0, %133, %cst_68 {dimension_numbers = #tpu.dot_dimension_numbers<[1], [0], [0], [1], [0, 0, 1, 1], [], []>} : vector<16x16xbf16>, vector<16x128xbf16>, vector<16x128xf32> -> vector<16x128xf32>
    %135 = arith.index_cast %c9_i32 : i32 to index
    %c0_69 = arith.constant 0 : index
    %c0_70 = arith.constant 0 : index
    %136 = vector.load %arg3[%135, %c0_69, %c0_70] : memref<20x1x128xf32, #tpu.memory_space<vmem>>, vector<1x1x128xf32>
    %137 = vector.shape_cast %136 : vector<1x1x128xf32> to vector<1x128xf32>
    %138 = vector.broadcast %137 : vector<1x128xf32> to vector<16x128xf32>
    %139 = arith.addf %134, %138 : vector<16x128xf32>
    %cst_71 = arith.constant 0.000000e+00 : f32
    %140 = vector.broadcast %cst_71 : f32 to vector<16x128xf32>
    %141 = arith.maximumf %139, %140 : vector<16x128xf32>
    %c10_i32 = arith.constant 10 : i32
    %142 = arith.truncf %141 : vector<16x128xf32> to vector<16x128xbf16>
    %143 = arith.index_cast %c10_i32 : i32 to index
    %c0_72 = arith.constant 0 : index
    %c0_73 = arith.constant 0 : index
    %144 = vector.load %arg2[%143, %c0_72, %c0_73] : memref<20x128x128xbf16, #tpu.memory_space<vmem>>, vector<1x128x128xbf16>
    %145 = vector.shape_cast %144 : vector<1x128x128xbf16> to vector<128x128xbf16>
    %cst_74 = arith.constant dense<0.000000e+00> : vector<16x128xf32>
    %146 = tpu.matmul %142, %145, %cst_74 {dimension_numbers = #tpu.dot_dimension_numbers<[1], [0], [0], [1], [0, 0, 1, 1], [], []>} : vector<16x128xbf16>, vector<128x128xbf16>, vector<16x128xf32> -> vector<16x128xf32>
    %147 = arith.truncf %146 : vector<16x128xf32> to vector<16x128xbf16>
    %cst_75 = arith.constant dense<0.000000e+00> : vector<16x128xf32>
    %148 = tpu.matmul %0, %147, %cst_75 {dimension_numbers = #tpu.dot_dimension_numbers<[1], [0], [0], [1], [0, 0, 1, 1], [], []>} : vector<16x16xbf16>, vector<16x128xbf16>, vector<16x128xf32> -> vector<16x128xf32>
    %149 = arith.index_cast %c10_i32 : i32 to index
    %c0_76 = arith.constant 0 : index
    %c0_77 = arith.constant 0 : index
    %150 = vector.load %arg3[%149, %c0_76, %c0_77] : memref<20x1x128xf32, #tpu.memory_space<vmem>>, vector<1x1x128xf32>
    %151 = vector.shape_cast %150 : vector<1x1x128xf32> to vector<1x128xf32>
    %152 = vector.broadcast %151 : vector<1x128xf32> to vector<16x128xf32>
    %153 = arith.addf %148, %152 : vector<16x128xf32>
    %cst_78 = arith.constant 0.000000e+00 : f32
    %154 = vector.broadcast %cst_78 : f32 to vector<16x128xf32>
    %155 = arith.maximumf %153, %154 : vector<16x128xf32>
    %c11_i32 = arith.constant 11 : i32
    %156 = arith.truncf %155 : vector<16x128xf32> to vector<16x128xbf16>
    %157 = arith.index_cast %c11_i32 : i32 to index
    %c0_79 = arith.constant 0 : index
    %c0_80 = arith.constant 0 : index
    %158 = vector.load %arg2[%157, %c0_79, %c0_80] : memref<20x128x128xbf16, #tpu.memory_space<vmem>>, vector<1x128x128xbf16>
    %159 = vector.shape_cast %158 : vector<1x128x128xbf16> to vector<128x128xbf16>
    %cst_81 = arith.constant dense<0.000000e+00> : vector<16x128xf32>
    %160 = tpu.matmul %156, %159, %cst_81 {dimension_numbers = #tpu.dot_dimension_numbers<[1], [0], [0], [1], [0, 0, 1, 1], [], []>} : vector<16x128xbf16>, vector<128x128xbf16>, vector<16x128xf32> -> vector<16x128xf32>
    %161 = arith.truncf %160 : vector<16x128xf32> to vector<16x128xbf16>
    %cst_82 = arith.constant dense<0.000000e+00> : vector<16x128xf32>
    %162 = tpu.matmul %0, %161, %cst_82 {dimension_numbers = #tpu.dot_dimension_numbers<[1], [0], [0], [1], [0, 0, 1, 1], [], []>} : vector<16x16xbf16>, vector<16x128xbf16>, vector<16x128xf32> -> vector<16x128xf32>
    %163 = arith.index_cast %c11_i32 : i32 to index
    %c0_83 = arith.constant 0 : index
    %c0_84 = arith.constant 0 : index
    %164 = vector.load %arg3[%163, %c0_83, %c0_84] : memref<20x1x128xf32, #tpu.memory_space<vmem>>, vector<1x1x128xf32>
    %165 = vector.shape_cast %164 : vector<1x1x128xf32> to vector<1x128xf32>
    %166 = vector.broadcast %165 : vector<1x128xf32> to vector<16x128xf32>
    %167 = arith.addf %162, %166 : vector<16x128xf32>
    %cst_85 = arith.constant 0.000000e+00 : f32
    %168 = vector.broadcast %cst_85 : f32 to vector<16x128xf32>
    %169 = arith.maximumf %167, %168 : vector<16x128xf32>
    %c12_i32 = arith.constant 12 : i32
    %170 = arith.truncf %169 : vector<16x128xf32> to vector<16x128xbf16>
    %171 = arith.index_cast %c12_i32 : i32 to index
    %c0_86 = arith.constant 0 : index
    %c0_87 = arith.constant 0 : index
    %172 = vector.load %arg2[%171, %c0_86, %c0_87] : memref<20x128x128xbf16, #tpu.memory_space<vmem>>, vector<1x128x128xbf16>
    %173 = vector.shape_cast %172 : vector<1x128x128xbf16> to vector<128x128xbf16>
    %cst_88 = arith.constant dense<0.000000e+00> : vector<16x128xf32>
    %174 = tpu.matmul %170, %173, %cst_88 {dimension_numbers = #tpu.dot_dimension_numbers<[1], [0], [0], [1], [0, 0, 1, 1], [], []>} : vector<16x128xbf16>, vector<128x128xbf16>, vector<16x128xf32> -> vector<16x128xf32>
    %175 = arith.truncf %174 : vector<16x128xf32> to vector<16x128xbf16>
    %cst_89 = arith.constant dense<0.000000e+00> : vector<16x128xf32>
    %176 = tpu.matmul %0, %175, %cst_89 {dimension_numbers = #tpu.dot_dimension_numbers<[1], [0], [0], [1], [0, 0, 1, 1], [], []>} : vector<16x16xbf16>, vector<16x128xbf16>, vector<16x128xf32> -> vector<16x128xf32>
    %177 = arith.index_cast %c12_i32 : i32 to index
    %c0_90 = arith.constant 0 : index
    %c0_91 = arith.constant 0 : index
    %178 = vector.load %arg3[%177, %c0_90, %c0_91] : memref<20x1x128xf32, #tpu.memory_space<vmem>>, vector<1x1x128xf32>
    %179 = vector.shape_cast %178 : vector<1x1x128xf32> to vector<1x128xf32>
    %180 = vector.broadcast %179 : vector<1x128xf32> to vector<16x128xf32>
    %181 = arith.addf %176, %180 : vector<16x128xf32>
    %cst_92 = arith.constant 0.000000e+00 : f32
    %182 = vector.broadcast %cst_92 : f32 to vector<16x128xf32>
    %183 = arith.maximumf %181, %182 : vector<16x128xf32>
    %c13_i32 = arith.constant 13 : i32
    %184 = arith.truncf %183 : vector<16x128xf32> to vector<16x128xbf16>
    %185 = arith.index_cast %c13_i32 : i32 to index
    %c0_93 = arith.constant 0 : index
    %c0_94 = arith.constant 0 : index
    %186 = vector.load %arg2[%185, %c0_93, %c0_94] : memref<20x128x128xbf16, #tpu.memory_space<vmem>>, vector<1x128x128xbf16>
    %187 = vector.shape_cast %186 : vector<1x128x128xbf16> to vector<128x128xbf16>
    %cst_95 = arith.constant dense<0.000000e+00> : vector<16x128xf32>
    %188 = tpu.matmul %184, %187, %cst_95 {dimension_numbers = #tpu.dot_dimension_numbers<[1], [0], [0], [1], [0, 0, 1, 1], [], []>} : vector<16x128xbf16>, vector<128x128xbf16>, vector<16x128xf32> -> vector<16x128xf32>
    %189 = arith.truncf %188 : vector<16x128xf32> to vector<16x128xbf16>
    %cst_96 = arith.constant dense<0.000000e+00> : vector<16x128xf32>
    %190 = tpu.matmul %0, %189, %cst_96 {dimension_numbers = #tpu.dot_dimension_numbers<[1], [0], [0], [1], [0, 0, 1, 1], [], []>} : vector<16x16xbf16>, vector<16x128xbf16>, vector<16x128xf32> -> vector<16x128xf32>
    %191 = arith.index_cast %c13_i32 : i32 to index
    %c0_97 = arith.constant 0 : index
    %c0_98 = arith.constant 0 : index
    %192 = vector.load %arg3[%191, %c0_97, %c0_98] : memref<20x1x128xf32, #tpu.memory_space<vmem>>, vector<1x1x128xf32>
    %193 = vector.shape_cast %192 : vector<1x1x128xf32> to vector<1x128xf32>
    %194 = vector.broadcast %193 : vector<1x128xf32> to vector<16x128xf32>
    %195 = arith.addf %190, %194 : vector<16x128xf32>
    %cst_99 = arith.constant 0.000000e+00 : f32
    %196 = vector.broadcast %cst_99 : f32 to vector<16x128xf32>
    %197 = arith.maximumf %195, %196 : vector<16x128xf32>
    %c14_i32 = arith.constant 14 : i32
    %198 = arith.truncf %197 : vector<16x128xf32> to vector<16x128xbf16>
    %199 = arith.index_cast %c14_i32 : i32 to index
    %c0_100 = arith.constant 0 : index
    %c0_101 = arith.constant 0 : index
    %200 = vector.load %arg2[%199, %c0_100, %c0_101] : memref<20x128x128xbf16, #tpu.memory_space<vmem>>, vector<1x128x128xbf16>
    %201 = vector.shape_cast %200 : vector<1x128x128xbf16> to vector<128x128xbf16>
    %cst_102 = arith.constant dense<0.000000e+00> : vector<16x128xf32>
    %202 = tpu.matmul %198, %201, %cst_102 {dimension_numbers = #tpu.dot_dimension_numbers<[1], [0], [0], [1], [0, 0, 1, 1], [], []>} : vector<16x128xbf16>, vector<128x128xbf16>, vector<16x128xf32> -> vector<16x128xf32>
    %203 = arith.truncf %202 : vector<16x128xf32> to vector<16x128xbf16>
    %cst_103 = arith.constant dense<0.000000e+00> : vector<16x128xf32>
    %204 = tpu.matmul %0, %203, %cst_103 {dimension_numbers = #tpu.dot_dimension_numbers<[1], [0], [0], [1], [0, 0, 1, 1], [], []>} : vector<16x16xbf16>, vector<16x128xbf16>, vector<16x128xf32> -> vector<16x128xf32>
    %205 = arith.index_cast %c14_i32 : i32 to index
    %c0_104 = arith.constant 0 : index
    %c0_105 = arith.constant 0 : index
    %206 = vector.load %arg3[%205, %c0_104, %c0_105] : memref<20x1x128xf32, #tpu.memory_space<vmem>>, vector<1x1x128xf32>
    %207 = vector.shape_cast %206 : vector<1x1x128xf32> to vector<1x128xf32>
    %208 = vector.broadcast %207 : vector<1x128xf32> to vector<16x128xf32>
    %209 = arith.addf %204, %208 : vector<16x128xf32>
    %cst_106 = arith.constant 0.000000e+00 : f32
    %210 = vector.broadcast %cst_106 : f32 to vector<16x128xf32>
    %211 = arith.maximumf %209, %210 : vector<16x128xf32>
    %c15_i32 = arith.constant 15 : i32
    %212 = arith.truncf %211 : vector<16x128xf32> to vector<16x128xbf16>
    %213 = arith.index_cast %c15_i32 : i32 to index
    %c0_107 = arith.constant 0 : index
    %c0_108 = arith.constant 0 : index
    %214 = vector.load %arg2[%213, %c0_107, %c0_108] : memref<20x128x128xbf16, #tpu.memory_space<vmem>>, vector<1x128x128xbf16>
    %215 = vector.shape_cast %214 : vector<1x128x128xbf16> to vector<128x128xbf16>
    %cst_109 = arith.constant dense<0.000000e+00> : vector<16x128xf32>
    %216 = tpu.matmul %212, %215, %cst_109 {dimension_numbers = #tpu.dot_dimension_numbers<[1], [0], [0], [1], [0, 0, 1, 1], [], []>} : vector<16x128xbf16>, vector<128x128xbf16>, vector<16x128xf32> -> vector<16x128xf32>
    %217 = arith.truncf %216 : vector<16x128xf32> to vector<16x128xbf16>
    %cst_110 = arith.constant dense<0.000000e+00> : vector<16x128xf32>
    %218 = tpu.matmul %0, %217, %cst_110 {dimension_numbers = #tpu.dot_dimension_numbers<[1], [0], [0], [1], [0, 0, 1, 1], [], []>} : vector<16x16xbf16>, vector<16x128xbf16>, vector<16x128xf32> -> vector<16x128xf32>
    %219 = arith.index_cast %c15_i32 : i32 to index
    %c0_111 = arith.constant 0 : index
    %c0_112 = arith.constant 0 : index
    %220 = vector.load %arg3[%219, %c0_111, %c0_112] : memref<20x1x128xf32, #tpu.memory_space<vmem>>, vector<1x1x128xf32>
    %221 = vector.shape_cast %220 : vector<1x1x128xf32> to vector<1x128xf32>
    %222 = vector.broadcast %221 : vector<1x128xf32> to vector<16x128xf32>
    %223 = arith.addf %218, %222 : vector<16x128xf32>
    %cst_113 = arith.constant 0.000000e+00 : f32
    %224 = vector.broadcast %cst_113 : f32 to vector<16x128xf32>
    %225 = arith.maximumf %223, %224 : vector<16x128xf32>
    %c16_i32 = arith.constant 16 : i32
    %226 = arith.truncf %225 : vector<16x128xf32> to vector<16x128xbf16>
    %227 = arith.index_cast %c16_i32 : i32 to index
    %c0_114 = arith.constant 0 : index
    %c0_115 = arith.constant 0 : index
    %228 = vector.load %arg2[%227, %c0_114, %c0_115] : memref<20x128x128xbf16, #tpu.memory_space<vmem>>, vector<1x128x128xbf16>
    %229 = vector.shape_cast %228 : vector<1x128x128xbf16> to vector<128x128xbf16>
    %cst_116 = arith.constant dense<0.000000e+00> : vector<16x128xf32>
    %230 = tpu.matmul %226, %229, %cst_116 {dimension_numbers = #tpu.dot_dimension_numbers<[1], [0], [0], [1], [0, 0, 1, 1], [], []>} : vector<16x128xbf16>, vector<128x128xbf16>, vector<16x128xf32> -> vector<16x128xf32>
    %231 = arith.truncf %230 : vector<16x128xf32> to vector<16x128xbf16>
    %cst_117 = arith.constant dense<0.000000e+00> : vector<16x128xf32>
    %232 = tpu.matmul %0, %231, %cst_117 {dimension_numbers = #tpu.dot_dimension_numbers<[1], [0], [0], [1], [0, 0, 1, 1], [], []>} : vector<16x16xbf16>, vector<16x128xbf16>, vector<16x128xf32> -> vector<16x128xf32>
    %233 = arith.index_cast %c16_i32 : i32 to index
    %c0_118 = arith.constant 0 : index
    %c0_119 = arith.constant 0 : index
    %234 = vector.load %arg3[%233, %c0_118, %c0_119] : memref<20x1x128xf32, #tpu.memory_space<vmem>>, vector<1x1x128xf32>
    %235 = vector.shape_cast %234 : vector<1x1x128xf32> to vector<1x128xf32>
    %236 = vector.broadcast %235 : vector<1x128xf32> to vector<16x128xf32>
    %237 = arith.addf %232, %236 : vector<16x128xf32>
    %cst_120 = arith.constant 0.000000e+00 : f32
    %238 = vector.broadcast %cst_120 : f32 to vector<16x128xf32>
    %239 = arith.maximumf %237, %238 : vector<16x128xf32>
    %c17_i32 = arith.constant 17 : i32
    %240 = arith.truncf %239 : vector<16x128xf32> to vector<16x128xbf16>
    %241 = arith.index_cast %c17_i32 : i32 to index
    %c0_121 = arith.constant 0 : index
    %c0_122 = arith.constant 0 : index
    %242 = vector.load %arg2[%241, %c0_121, %c0_122] : memref<20x128x128xbf16, #tpu.memory_space<vmem>>, vector<1x128x128xbf16>
    %243 = vector.shape_cast %242 : vector<1x128x128xbf16> to vector<128x128xbf16>
    %cst_123 = arith.constant dense<0.000000e+00> : vector<16x128xf32>
    %244 = tpu.matmul %240, %243, %cst_123 {dimension_numbers = #tpu.dot_dimension_numbers<[1], [0], [0], [1], [0, 0, 1, 1], [], []>} : vector<16x128xbf16>, vector<128x128xbf16>, vector<16x128xf32> -> vector<16x128xf32>
    %245 = arith.truncf %244 : vector<16x128xf32> to vector<16x128xbf16>
    %cst_124 = arith.constant dense<0.000000e+00> : vector<16x128xf32>
    %246 = tpu.matmul %0, %245, %cst_124 {dimension_numbers = #tpu.dot_dimension_numbers<[1], [0], [0], [1], [0, 0, 1, 1], [], []>} : vector<16x16xbf16>, vector<16x128xbf16>, vector<16x128xf32> -> vector<16x128xf32>
    %247 = arith.index_cast %c17_i32 : i32 to index
    %c0_125 = arith.constant 0 : index
    %c0_126 = arith.constant 0 : index
    %248 = vector.load %arg3[%247, %c0_125, %c0_126] : memref<20x1x128xf32, #tpu.memory_space<vmem>>, vector<1x1x128xf32>
    %249 = vector.shape_cast %248 : vector<1x1x128xf32> to vector<1x128xf32>
    %250 = vector.broadcast %249 : vector<1x128xf32> to vector<16x128xf32>
    %251 = arith.addf %246, %250 : vector<16x128xf32>
    %cst_127 = arith.constant 0.000000e+00 : f32
    %252 = vector.broadcast %cst_127 : f32 to vector<16x128xf32>
    %253 = arith.maximumf %251, %252 : vector<16x128xf32>
    %c18_i32 = arith.constant 18 : i32
    %254 = arith.truncf %253 : vector<16x128xf32> to vector<16x128xbf16>
    %255 = arith.index_cast %c18_i32 : i32 to index
    %c0_128 = arith.constant 0 : index
    %c0_129 = arith.constant 0 : index
    %256 = vector.load %arg2[%255, %c0_128, %c0_129] : memref<20x128x128xbf16, #tpu.memory_space<vmem>>, vector<1x128x128xbf16>
    %257 = vector.shape_cast %256 : vector<1x128x128xbf16> to vector<128x128xbf16>
    %cst_130 = arith.constant dense<0.000000e+00> : vector<16x128xf32>
    %258 = tpu.matmul %254, %257, %cst_130 {dimension_numbers = #tpu.dot_dimension_numbers<[1], [0], [0], [1], [0, 0, 1, 1], [], []>} : vector<16x128xbf16>, vector<128x128xbf16>, vector<16x128xf32> -> vector<16x128xf32>
    %259 = arith.truncf %258 : vector<16x128xf32> to vector<16x128xbf16>
    %cst_131 = arith.constant dense<0.000000e+00> : vector<16x128xf32>
    %260 = tpu.matmul %0, %259, %cst_131 {dimension_numbers = #tpu.dot_dimension_numbers<[1], [0], [0], [1], [0, 0, 1, 1], [], []>} : vector<16x16xbf16>, vector<16x128xbf16>, vector<16x128xf32> -> vector<16x128xf32>
    %261 = arith.index_cast %c18_i32 : i32 to index
    %c0_132 = arith.constant 0 : index
    %c0_133 = arith.constant 0 : index
    %262 = vector.load %arg3[%261, %c0_132, %c0_133] : memref<20x1x128xf32, #tpu.memory_space<vmem>>, vector<1x1x128xf32>
    %263 = vector.shape_cast %262 : vector<1x1x128xf32> to vector<1x128xf32>
    %264 = vector.broadcast %263 : vector<1x128xf32> to vector<16x128xf32>
    %265 = arith.addf %260, %264 : vector<16x128xf32>
    %cst_134 = arith.constant 0.000000e+00 : f32
    %266 = vector.broadcast %cst_134 : f32 to vector<16x128xf32>
    %267 = arith.maximumf %265, %266 : vector<16x128xf32>
    %c19_i32 = arith.constant 19 : i32
    %268 = arith.truncf %267 : vector<16x128xf32> to vector<16x128xbf16>
    %c19 = arith.constant 19 : index
    %c0_135 = arith.constant 0 : index
    %c0_136 = arith.constant 0 : index
    %269 = vector.load %arg2[%c19, %c0_135, %c0_136] : memref<20x128x128xbf16, #tpu.memory_space<vmem>>, vector<1x128x128xbf16>
    %270 = vector.shape_cast %269 : vector<1x128x128xbf16> to vector<128x128xbf16>
    %cst_137 = arith.constant dense<0.000000e+00> : vector<16x128xf32>
    %271 = tpu.matmul %268, %270, %cst_137 {dimension_numbers = #tpu.dot_dimension_numbers<[1], [0], [0], [1], [0, 0, 1, 1], [], []>} : vector<16x128xbf16>, vector<128x128xbf16>, vector<16x128xf32> -> vector<16x128xf32>
    %272 = arith.truncf %271 : vector<16x128xf32> to vector<16x128xbf16>
    %cst_138 = arith.constant dense<0.000000e+00> : vector<16x128xf32>
    %273 = tpu.matmul %0, %272, %cst_138 {dimension_numbers = #tpu.dot_dimension_numbers<[1], [0], [0], [1], [0, 0, 1, 1], [], []>} : vector<16x16xbf16>, vector<16x128xbf16>, vector<16x128xf32> -> vector<16x128xf32>
    %c19_139 = arith.constant 19 : index
    %c0_140 = arith.constant 0 : index
    %c0_141 = arith.constant 0 : index
    %274 = vector.load %arg3[%c19_139, %c0_140, %c0_141] : memref<20x1x128xf32, #tpu.memory_space<vmem>>, vector<1x1x128xf32>
    %275 = vector.shape_cast %274 : vector<1x1x128xf32> to vector<1x128xf32>
    %276 = vector.broadcast %275 : vector<1x128xf32> to vector<16x128xf32>
    %277 = arith.addf %273, %276 : vector<16x128xf32>
    %c0_142 = arith.constant 0 : index
    %c0_143 = arith.constant 0 : index
    %278 = vector.load %arg4[%c0_142, %c0_143] : memref<16x128xf32, #tpu.memory_space<vmem>>, vector<16x128xf32>
    tpu.vector_store %arg4[%c0_142, %c0_143], %277 {strides = array<i32>} : memref<16x128xf32, #tpu.memory_space<vmem>>, vector<16x128xf32>,
    return
  }
}

</mosaic_0001>

<bundles_post_ra>
// kernel: detection_gcn_forward.1
= control target key start
LH: loop header
LB: loop body
LE: loop exit
PB: predicated region body
PF: predicated region fallthrough
CT: control target
= control target key end

     0   :  { %9 = vsyncpa [#allocation3], 0  ;;  %s4379_s15 = smov [#allocation2]   ;;  %s4803_s0 = inlined_call_operand.vmem [shape: bf16[16,16], index: 0, kind: input, shape index: {}]   ;;  %s4804_s1 = inlined_call_operand.vmem [shape: f32[16,128], index: 1, kind: input, shape index: {}]   ;;  %s4805_s2 = inlined_call_operand.hbm [shape: bf16[20,128,128], index: 2, kind: input, shape index: {}]   ;;  %s4806_s3 = inlined_call_operand.vmem [shape: f32[20,1,128], index: 3, kind: input, shape index: {}]   ;;  %s4807_s4 = inlined_call_operand.vmem [shape: f32[16,128], index: 4, kind: output, shape index: {}]  }
   0x1   :  { %s19_s16 = sshll.u32 %s4379_s15, 4  ;;  %s4355_s19 = scalar_lea.hbm %s4805_s2, 20480  ;;  %s20_s16 = int_to_ptr.vmem [resolvable:$true] %s19_s16 }
   0x2   :  { %p4356_p0 = scmp.ne.s32.totalorder %s4805_s2, %s4355_s19  ;;  %p4359_p1 = scmp.lt.u32.totalorder %s4355_s19, %s4805_s2 }
   0x4   :  { %p4361_p2 = pnand %p4359_p1, %p4356_p0 }
   0x6   :  { %4364 = shalt.err (!%p4361_p2)
}
   0x7   :  { %s4365_s24 = scalar_lea.vmem %s20_s16, 20480  ;;  %p4370_p4 = scmp.lt.s32.totalorder %s20_s16, %s20_s16 }
   0x8   :  { %p4366_p3 = scmp.ne.s32.totalorder %s20_s16, %s4365_s24  ;;  %p4371_p5 = scmp.lt.s32.totalorder %s4365_s24, %s4365_s24 }
   0xa   :  { %p4372_p6 = por %p4371_p5, %p4370_p4 }
   0xc   :  { %p4373_p7 = pnand %p4372_p6, %p4366_p3 }
   0xe   :  { %4376 = shalt.err (!%p4373_p7)
}
   0xf   :  { %s4380_s25 = smov 64   ;;  %s4381_s26 = smov 4  }
  0x10   :  { %25 = dma.hbm_to_vmem [thread:$0]  %s4805_s2, 20480, %s20_s16, [#allocation3], %s4380_s25, %s4380_s25, %s4381_s26  }
  0x11   :  { %4377 = dma.done.wait [#allocation3], 20480  }
  0x12   :  { %4378 = vsyncadd [#allocation3], 4294946816  ;;  %v4382_v0 = vmov 0.0   ;;  %vm4383_vm0 = vmmov 0   ;;  %v4193_v1 = vld [vmem:[#allocation2] sm:$0xff]   ;;  %v4194_v2 = vld [vmem:[#allocation2 + $0x8] sm:$0xff]  }
  0x13   :  { %3668 = vmatprep.subr.bf16.mxu0 %v4382_v0  ;;  %3684 = vmatprep.mubr.msk.bf16.mxu0 %vm4383_vm0, %v4382_v0  ;;  %v4195_v3 = vld [vmem:[#allocation2 + $0x10] sm:$0xff]   ;;  %v4196_v4 = vld [vmem:[#allocation2 + $0x18] sm:$0xff]   ;;  %v4197_v5 = vld [vmem:[#allocation2 + $0x20] sm:$0xff]   ;;  %vm155_vm1 = vcmask 130048  }
  0x14   :  { %3688 = vmatprep.subr.bf16.mxu1 %v4382_v0  ;;  %3690 = vmatprep.mubr.msk.bf16.mxu1 %vm4383_vm0, %v4382_v0  ;;  %v4198_v6 = vld [vmem:[#allocation2 + $0x28] sm:$0xff]   ;;  %v4199_v7 = vld [vmem:[#allocation2 + $0x30] sm:$0xff]   ;;  %v4200_v8 = vld [vmem:[#allocation2 + $0x38] sm:$0xff]  }
  0x15   :  { %3669 = vmatpush3.bf16.msra.mxu0 %v4193_v1  ;;  %v34_v9 = vld [vmem:[%s4804_s1] sm:$0xff]  ;;  %v35_v10 = vld [vmem:[%s4804_s1 + $0x8] sm:$0xff]  ;;  %v4204_v20 = vld [vmem:[#allocation2 + $0x50] sm:$0xff]  }
  0x16   :  { %3670 = vmatprep.subr.bf16.mxu0 %v4382_v0  ;;  %v36_v11 = vpack.c.bf16 %v35_v10, %v34_v9  ;;  %v4446_v17 = vld [vmem:[%s4803_s0] sm:$0xff]   ;;  %v4203_v19 = vld [vmem:[#allocation2 + $0x48] sm:$0xff]   ;;  %v4205_v21 = vld [vmem:[#allocation2 + $0x58] sm:$0xff]  }
  0x17   :  { %v4202_v18 = vld [vmem:[#allocation2 + $0x40] sm:$0xff]   ;;  %v4207_v23 = vld [vmem:[#allocation2 + $0x68] sm:$0xff]   ;;  %v4208_v24 = vld [vmem:[#allocation2 + $0x70] sm:$0xff]  }
  0x18   :  { %v4206_v22 = vld [vmem:[#allocation2 + $0x60] sm:$0xff]   ;;  %v4209_v25 = vld [vmem:[#allocation2 + $0x78] sm:$0xff]   ;;  %v4211_v37 = vld [vmem:[#allocation2 + $0x88] sm:$0xff]  }
  0x19   :  { %3671 = vmatpush3.bf16.msra.mxu0 %v4194_v2  ;;  %v3236_v26 = vld [vmem:[%s4806_s3] ss:$0 sm:$0xff]  ;;  %v4212_v38 = vld [vmem:[#allocation2 + $0x90] sm:$0xff]   ;;  %v4213_v39 = vld [vmem:[#allocation2 + $0x98] sm:$0xff]  }
  0x1a   :  { %3672 = vmatprep.subr.bf16.mxu0 %v4382_v0  ;;  %v4210_v36 = vld [vmem:[#allocation2 + $0x80] sm:$0xff]   ;;  %v4215_v41 = vld [vmem:[#allocation2 + $0xa8] sm:$0xff]   ;;  %v4216_v47 = vld [vmem:[#allocation2 + $0xb0] sm:$0xff]  }
  0x1b   :  { %v4214_v40 = vld [vmem:[#allocation2 + $0xa0] sm:$0xff]   ;;  %v4217_v48 = vld [vmem:[#allocation2 + $0xb8] sm:$0xff]   ;;  %v4219_v2 = vld [vmem:[#allocation2 + $0xc8] sm:$0xff]  }
  0x1c   :  { %v3248_v49 = vld [vmem:[%s4806_s3 + $0x1] ss:$0 sm:$0xff]  ;;  %v3259_v9 = vld [vmem:[%s4806_s3 + $0x2] ss:$0 sm:$0xff] }
  0x1d   :  { %3673 = vmatpush3.bf16.msra.mxu0 %v4195_v3  ;;  %v4218_v1 = vld [vmem:[#allocation2 + $0xc0] sm:$0xff]   ;;  %v4220_v3 = vld [vmem:[#allocation2 + $0xd0] sm:$0xff]  }
  0x1e   :  { %3674 = vmatprep.subr.bf16.mxu0 %v4382_v0 }
  0x21   :  { %3675 = vmatpush3.bf16.msra.mxu0 %v4196_v4  ;;  %v4221_v4 = vld [vmem:[#allocation2 + $0xd8] sm:$0xff]  }
  0x22   :  { %3676 = vmatprep.subr.bf16.mxu0 %v4382_v0 }
  0x25   :  { %3677 = vmatpush3.bf16.msra.mxu0 %v4197_v5  ;;  %v4222_v5 = vld [vmem:[#allocation2 + $0xe0] sm:$0xff]  }
  0x26   :  { %3678 = vmatprep.subr.bf16.mxu0 %v4382_v0 }
  0x29   :  { %3679 = vmatpush3.bf16.msra.mxu0 %v4198_v6  ;;  %v4223_v6 = vld [vmem:[#allocation2 + $0xe8] sm:$0xff]  }
  0x2a   :  { %3680 = vmatprep.subr.bf16.mxu0 %v4382_v0 }
  0x2d   :  { %3681 = vmatpush3.bf16.msra.mxu0 %v4199_v7  ;;  %v4224_v7 = vld [vmem:[#allocation2 + $0xf0] sm:$0xff]  }
  0x2e   :  { %3682 = vmatprep.subr.bf16.mxu0 %v4382_v0 }
  0x31   :  { %3683 = vmatpush3.bf16.msra.mxu0 %v4200_v8  ;;  %v4225_v8 = vld [vmem:[#allocation2 + $0xf8] sm:$0xff]  }
  0x32   :  { %3714 = vmatprep.subr.bf16.mxu0 %v4382_v0 }
  0x34   :  { %3685 = vmatmul.mubr.bf16.vlgmr.msra.gmra.mrb[0].mxu0 %v36_v11 }
  0x35   :  { %3716 = vmatprep.mubr.msk.bf16.mxu0 %vm4383_vm0, %v4382_v0 }
 0x107   :  { %v135_v12 = vpop.f32.mrb[0].mxu0 }
 0x108   :  { %v3686_v13 = vpop.f32.mrb[1].mxu0 }
 0x109   :  { %v138_v14 = vpop.f32.mrb[2].mxu0 }
 0x10a   :  { %v142_v15 = vpack.c.bf16 %v138_v14, %v135_v12  ;;  %v3687_v16 = vpop.f32.mrb[3].mxu0 }
 0x10c   :  { %3689 = vmatpush3.bf16.msra.mxu1 %v142_v15 }
 0x10d   :  { %3694 = vmatprep.subr.bf16.mxu1 %v4382_v0 }
 0x10f   :  { %3691 = vmatmul.mubr.msk.bf16.vlgmr.msra.gmra.mrb[0].mxu1 %vm155_vm1, %v4446_v17 }
 0x110   :  { %3695 = vmatpush3.bf16.msra.mxu1 %v4202_v18  ;;  %3710 = vmatprep.mubr.msk.bf16.mxu1 %vm4383_vm0, %v4382_v0 }
 0x111   :  { %3696 = vmatprep.subr.bf16.mxu1 %v4382_v0 }
 0x114   :  { %3697 = vmatpush3.bf16.msra.mxu1 %v4203_v19 }
 0x115   :  { %3698 = vmatprep.subr.bf16.mxu1 %v4382_v0 }
 0x118   :  { %3699 = vmatpush3.bf16.msra.mxu1 %v4204_v20 }
 0x119   :  { %3700 = vmatprep.subr.bf16.mxu1 %v4382_v0 }
 0x11c   :  { %3701 = vmatpush3.bf16.msra.mxu1 %v4205_v21 }
 0x11d   :  { %3702 = vmatprep.subr.bf16.mxu1 %v4382_v0 }
 0x120   :  { %3703 = vmatpush3.bf16.msra.mxu1 %v4206_v22 }
 0x121   :  { %3704 = vmatprep.subr.bf16.mxu1 %v4382_v0 }
 0x124   :  { %3705 = vmatpush3.bf16.msra.mxu1 %v4207_v23 }
 0x125   :  { %3706 = vmatprep.subr.bf16.mxu1 %v4382_v0 }
 0x128   :  { %3707 = vmatpush3.bf16.msra.mxu1 %v4208_v24 }
 0x129   :  { %3708 = vmatprep.subr.bf16.mxu1 %v4382_v0 }
 0x12c   :  { %3709 = vmatpush3.bf16.msra.mxu1 %v4209_v25  ;;  %v4226_v25 = vld [vmem:[#allocation2 + $0x100] sm:$0xff]  }
 0x12d   :  { %3720 = vmatprep.subr.bf16.mxu1 %v4382_v0 }
 0x1e2   :  { %v193_v27 = vpop.f32.mrb[0].mxu1 }
 0x1e3   :  { %v194_v28 = vadd.f32 %v3236_v26, %v193_v27  ;;  %v3692_v29 = vpop.f32.mrb[1].mxu1  ;;  %v4228_v27 = vld [vmem:[#allocation2 + $0x110] sm:$0xff]  }
 0x1e4   :  { %v196_v30 = vpop.f32.mrb[2].mxu1  ;;  %v4230_v29 = vld [vmem:[#allocation2 + $0x120] sm:$0xff]  }
 0x1e5   :  { %v197_v31 = vadd.f32 %v3236_v26, %v196_v30  ;;  %v3693_v32 = vpop.f32.mrb[3].mxu1  ;;  %v200_v33 = vmax.f32 %v194_v28, 0.0  ;;  %v4227_v26 = vld [vmem:[#allocation2 + $0x108] sm:$0xff]   ;;  %v4229_v28 = vld [vmem:[#allocation2 + $0x118] sm:$0xff]  }
 0x1e6   :  { %v4231_v30 = vld [vmem:[#allocation2 + $0x128] sm:$0xff]   ;;  %v4233_v32 = vld [vmem:[#allocation2 + $0x138] sm:$0xff]  }
 0x1e7   :  { %v201_v34 = vmax.f32 %v197_v31, 0.0  ;;  %v4232_v31 = vld [vmem:[#allocation2 + $0x130] sm:$0xff]  }
 0x1e9   :  { %v202_v35 = vpack.c.bf16 %v201_v34, %v200_v33  ;;  %v3270_v33 = vld [vmem:[%s4806_s3 + $0x3] ss:$0 sm:$0xff] }
 0x1eb   :  { %3711 = vmatmul.mubr.bf16.vlgmr.msra.gmra.mrb[4].mxu1 %v202_v35 }
 0x1ec   :  { %3736 = vmatprep.mubr.msk.bf16.mxu1 %vm4383_vm0, %v4382_v0  ;;  %3721 = vmatpush3.bf16.msra.mxu1 %v4210_v36 }
 0x1ed   :  { %3722 = vmatprep.subr.bf16.mxu1 %v4382_v0 }
 0x1f0   :  { %3723 = vmatpush3.bf16.msra.mxu1 %v4211_v37 }
 0x1f1   :  { %3724 = vmatprep.subr.bf16.mxu1 %v4382_v0 }
 0x1f4   :  { %3725 = vmatpush3.bf16.msra.mxu1 %v4212_v38 }
 0x1f5   :  { %3726 = vmatprep.subr.bf16.mxu1 %v4382_v0 }
 0x1f8   :  { %3727 = vmatpush3.bf16.msra.mxu1 %v4213_v39 }
 0x1f9   :  { %3728 = vmatprep.subr.bf16.mxu1 %v4382_v0 }
 0x1fc   :  { %3729 = vmatpush3.bf16.msra.mxu1 %v4214_v40 }
 0x1fd   :  { %3730 = vmatprep.subr.bf16.mxu1 %v4382_v0 }
 0x200   :  { %3731 = vmatpush3.bf16.msra.mxu1 %v4215_v41 }
 0x201   :  { %3732 = vmatprep.subr.bf16.mxu1 %v4382_v0 }
 0x204   :  { %3733 = vmatpush3.bf16.msra.mxu1 %v4216_v47 }
 0x205   :  { %3734 = vmatprep.subr.bf16.mxu1 %v4382_v0 }
 0x208   :  { %3735 = vmatpush3.bf16.msra.mxu1 %v4217_v48  ;;  %v4234_v48 = vld [vmem:[#allocation2 + $0x140] sm:$0xff]  }
 0x209   :  { %3766 = vmatprep.subr.bf16.mxu1 %v4382_v0 }
 0x2be   :  { %v302_v42 = vpop.f32.mrb[4].mxu1 }
 0x2bf   :  { %v3712_v43 = vpop.f32.mrb[5].mxu1 }
 0x2c0   :  { %v305_v44 = vpop.f32.mrb[6].mxu1 }
 0x2c1   :  { %v309_v45 = vpack.c.bf16 %v305_v44, %v302_v42  ;;  %v3713_v46 = vpop.f32.mrb[7].mxu1 }
 0x2c3   :  { %3715 = vmatpush3.bf16.msra.mxu0 %v309_v45 }
 0x2c4   :  { %3740 = vmatprep.subr.bf16.mxu0 %v4382_v0 }
 0x2c6   :  { %3717 = vmatmul.mubr.msk.bf16.vlgmr.msra.gmra.mrb[4].mxu0 %vm155_vm1, %v4446_v17 }
 0x2c7   :  { %3742 = vmatprep.mubr.msk.bf16.mxu0 %vm4383_vm0, %v4382_v0 }
 0x399   :  { %v352_v50 = vpop.f32.mrb[4].mxu0 }
 0x39a   :  { %v353_v51 = vadd.f32 %v3248_v49, %v352_v50  ;;  %v3718_v52 = vpop.f32.mrb[5].mxu0  ;;  %v4236_v50 = vld [vmem:[#allocation2 + $0x150] sm:$0xff]  }
 0x39b   :  { %v355_v53 = vpop.f32.mrb[6].mxu0  ;;  %v4238_v52 = vld [vmem:[#allocation2 + $0x160] sm:$0xff]  }
 0x39c   :  { %v356_v54 = vadd.f32 %v3248_v49, %v355_v53  ;;  %v3719_v55 = vpop.f32.mrb[7].mxu0  ;;  %v359_v56 = vmax.f32 %v353_v51, 0.0  ;;  %v4235_v49 = vld [vmem:[#allocation2 + $0x148] sm:$0xff]   ;;  %v4237_v51 = vld [vmem:[#allocation2 + $0x158] sm:$0xff]  }
 0x39d   :  { %v4239_v53 = vld [vmem:[#allocation2 + $0x168] sm:$0xff]   ;;  %v4241_v55 = vld [vmem:[#allocation2 + $0x178] sm:$0xff]  }
 0x39e   :  { %v360_v57 = vmax.f32 %v356_v54, 0.0  ;;  %v4240_v54 = vld [vmem:[#allocation2 + $0x170] sm:$0xff]  }
 0x3a0   :  { %v361_v58 = vpack.c.bf16 %v360_v57, %v359_v56  ;;  %v3281_v56 = vld [vmem:[%s4806_s3 + $0x4] ss:$0 sm:$0xff] }
 0x3a2   :  { %3737 = vmatmul.mubr.bf16.vlgmr.msra.gmra.mrb[8].mxu1 %v361_v58 }
 0x3a3   :  { %3768 = vmatprep.mubr.msk.bf16.mxu1 %vm4383_vm0, %v4382_v0 }
 0x475   :  { %v461_v59 = vpop.f32.mrb[8].mxu1 }
 0x476   :  { %v3738_v60 = vpop.f32.mrb[9].mxu1 }
 0x477   :  { %v464_v61 = vpop.f32.mrb[10].mxu1 }
 0x478   :  { %v468_v62 = vpack.c.bf16 %v464_v61, %v461_v59  ;;  %v3739_v63 = vpop.f32.mrb[11].mxu1 }
 0x47a   :  { %3741 = vmatpush3.bf16.msra.mxu0 %v468_v62 }
 0x47b   :  { %3746 = vmatprep.subr.bf16.mxu0 %v4382_v0 }
 0x47d   :  { %3743 = vmatmul.mubr.msk.bf16.vlgmr.msra.gmra.mrb[8].mxu0 %vm155_vm1, %v4446_v17 }
 0x47e   :  { %3747 = vmatpush3.bf16.msra.mxu0 %v4218_v1  ;;  %3762 = vmatprep.mubr.msk.bf16.mxu0 %vm4383_vm0, %v4382_v0 }
 0x47f   :  { %3748 = vmatprep.subr.bf16.mxu0 %v4382_v0 }
 0x482   :  { %3749 = vmatpush3.bf16.msra.mxu0 %v4219_v2 }
 0x483   :  { %3750 = vmatprep.subr.bf16.mxu0 %v4382_v0 }
 0x486   :  { %3751 = vmatpush3.bf16.msra.mxu0 %v4220_v3 }
 0x487   :  { %3752 = vmatprep.subr.bf16.mxu0 %v4382_v0 }
 0x48a   :  { %3753 = vmatpush3.bf16.msra.mxu0 %v4221_v4 }
 0x48b   :  { %3754 = vmatprep.subr.bf16.mxu0 %v4382_v0 }
 0x48e   :  { %3755 = vmatpush3.bf16.msra.mxu0 %v4222_v5 }
 0x48f   :  { %3756 = vmatprep.subr.bf16.mxu0 %v4382_v0 }
 0x492   :  { %3757 = vmatpush3.bf16.msra.mxu0 %v4223_v6 }
 0x493   :  { %3758 = vmatprep.subr.bf16.mxu0 %v4382_v0 }
 0x496   :  { %3759 = vmatpush3.bf16.msra.mxu0 %v4224_v7 }
 0x497   :  { %3760 = vmatprep.subr.bf16.mxu0 %v4382_v0 }
 0x49a   :  { %3761 = vmatpush3.bf16.msra.mxu0 %v4225_v8  ;;  %v4242_v8 = vld [vmem:[#allocation2 + $0x180] sm:$0xff]  }
 0x49b   :  { %3792 = vmatprep.subr.bf16.mxu0 %v4382_v0 }
 0x550   :  { %v511_v10 = vpop.f32.mrb[8].mxu0 }
 0x551   :  { %v512_v11 = vadd.f32 %v3259_v9, %v511_v10  ;;  %v3744_v12 = vpop.f32.mrb[9].mxu0  ;;  %v4244_v10 = vld [vmem:[#allocation2 + $0x190] sm:$0xff]  }
 0x552   :  { %v514_v13 = vpop.f32.mrb[10].mxu0  ;;  %v4246_v12 = vld [vmem:[#allocation2 + $0x1a0] sm:$0xff]  }
 0x553   :  { %v515_v14 = vadd.f32 %v3259_v9, %v514_v13  ;;  %v3745_v15 = vpop.f32.mrb[11].mxu0  ;;  %v518_v16 = vmax.f32 %v512_v11, 0.0  ;;  %v4243_v9 = vld [vmem:[#allocation2 + $0x188] sm:$0xff]   ;;  %v4245_v11 = vld [vmem:[#allocation2 + $0x198] sm:$0xff]  }
 0x554   :  { %v4247_v13 = vld [vmem:[#allocation2 + $0x1a8] sm:$0xff]   ;;  %v4249_v15 = vld [vmem:[#allocation2 + $0x1b8] sm:$0xff]  }
 0x555   :  { %v519_v18 = vmax.f32 %v515_v14, 0.0  ;;  %v4248_v14 = vld [vmem:[#allocation2 + $0x1b0] sm:$0xff]  }
 0x557   :  { %v520_v19 = vpack.c.bf16 %v519_v18, %v518_v16  ;;  %v3292_v16 = vld [vmem:[%s4806_s3 + $0x5] ss:$0 sm:$0xff] }
 0x559   :  { %3763 = vmatmul.mubr.bf16.vlgmr.msra.gmra.mrb[12].mxu0 %v520_v19 }
 0x55a   :  { %3794 = vmatprep.mubr.msk.bf16.mxu0 %vm4383_vm0, %v4382_v0 }
 0x62c   :  { %v620_v20 = vpop.f32.mrb[12].mxu0 }
 0x62d   :  { %v3764_v21 = vpop.f32.mrb[13].mxu0 }
 0x62e   :  { %v623_v22 = vpop.f32.mrb[14].mxu0 }
 0x62f   :  { %v627_v23 = vpack.c.bf16 %v623_v22, %v620_v20  ;;  %v3765_v24 = vpop.f32.mrb[15].mxu0 }
 0x631   :  { %3767 = vmatpush3.bf16.msra.mxu1 %v627_v23 }
 0x632   :  { %3772 = vmatprep.subr.bf16.mxu1 %v4382_v0 }
 0x634   :  { %3769 = vmatmul.mubr.msk.bf16.vlgmr.msra.gmra.mrb[12].mxu1 %vm155_vm1, %v4446_v17 }
 0x635   :  { %3773 = vmatpush3.bf16.msra.mxu1 %v4226_v25  ;;  %3788 = vmatprep.mubr.msk.bf16.mxu1 %vm4383_vm0, %v4382_v0 }
 0x636   :  { %3774 = vmatprep.subr.bf16.mxu1 %v4382_v0 }
 0x639   :  { %3775 = vmatpush3.bf16.msra.mxu1 %v4227_v26 }
 0x63a   :  { %3776 = vmatprep.subr.bf16.mxu1 %v4382_v0 }
 0x63d   :  { %3777 = vmatpush3.bf16.msra.mxu1 %v4228_v27 }
 0x63e   :  { %3778 = vmatprep.subr.bf16.mxu1 %v4382_v0 }
 0x641   :  { %3779 = vmatpush3.bf16.msra.mxu1 %v4229_v28 }
 0x642   :  { %3780 = vmatprep.subr.bf16.mxu1 %v4382_v0 }
 0x645   :  { %3781 = vmatpush3.bf16.msra.mxu1 %v4230_v29 }
 0x646   :  { %3782 = vmatprep.subr.bf16.mxu1 %v4382_v0 }
 0x649   :  { %3783 = vmatpush3.bf16.msra.mxu1 %v4231_v30 }
 0x64a   :  { %3784 = vmatprep.subr.bf16.mxu1 %v4382_v0 }
 0x64d   :  { %3785 = vmatpush3.bf16.msra.mxu1 %v4232_v31 }
 0x64e   :  { %3786 = vmatprep.subr.bf16.mxu1 %v4382_v0 }
 0x651   :  { %3787 = vmatpush3.bf16.msra.mxu1 %v4233_v32  ;;  %v4250_v32 = vld [vmem:[#allocation2 + $0x1c0] sm:$0xff]  }
 0x652   :  { %3818 = vmatprep.subr.bf16.mxu1 %v4382_v0 }
 0x707   :  { %v670_v34 = vpop.f32.mrb[12].mxu1 }
 0x708   :  { %v671_v35 = vadd.f32 %v3270_v33, %v670_v34  ;;  %v3770_v36 = vpop.f32.mrb[13].mxu1  ;;  %v4252_v34 = vld [vmem:[#allocation2 + $0x1d0] sm:$0xff]  }
 0x709   :  { %v673_v37 = vpop.f32.mrb[14].mxu1  ;;  %v4254_v36 = vld [vmem:[#allocation2 + $0x1e0] sm:$0xff]  }
 0x70a   :  { %v674_v38 = vadd.f32 %v3270_v33, %v673_v37  ;;  %v3771_v39 = vpop.f32.mrb[15].mxu1  ;;  %v677_v40 = vmax.f32 %v671_v35, 0.0  ;;  %v4251_v33 = vld [vmem:[#allocation2 + $0x1c8] sm:$0xff]   ;;  %v4253_v35 = vld [vmem:[#allocation2 + $0x1d8] sm:$0xff]  }
 0x70b   :  { %v4255_v37 = vld [vmem:[#allocation2 + $0x1e8] sm:$0xff]   ;;  %v4257_v39 = vld [vmem:[#allocation2 + $0x1f8] sm:$0xff]  }
 0x70c   :  { %v678_v41 = vmax.f32 %v674_v38, 0.0  ;;  %v4256_v38 = vld [vmem:[#allocation2 + $0x1f0] sm:$0xff]  }
 0x70e   :  { %v679_v42 = vpack.c.bf16 %v678_v41, %v677_v40  ;;  %v3303_v40 = vld [vmem:[%s4806_s3 + $0x6] ss:$0 sm:$0xff] }
 0x710   :  { %3789 = vmatmul.mubr.bf16.vlgmr.msra.gmra.mrb[16].mxu1 %v679_v42 }
 0x711   :  { %3820 = vmatprep.mubr.msk.bf16.mxu1 %vm4383_vm0, %v4382_v0 }
 0x7e3   :  { %v779_v43 = vpop.f32.mrb[16].mxu1 }
 0x7e4   :  { %v3790_v44 = vpop.f32.mrb[17].mxu1 }
 0x7e5   :  { %v782_v45 = vpop.f32.mrb[18].mxu1 }
 0x7e6   :  { %v786_v46 = vpack.c.bf16 %v782_v45, %v779_v43  ;;  %v3791_v47 = vpop.f32.mrb[19].mxu1 }
 0x7e8   :  { %3793 = vmatpush3.bf16.msra.mxu0 %v786_v46 }
 0x7e9   :  { %3798 = vmatprep.subr.bf16.mxu0 %v4382_v0 }
 0x7eb   :  { %3795 = vmatmul.mubr.msk.bf16.vlgmr.msra.gmra.mrb[16].mxu0 %vm155_vm1, %v4446_v17 }
 0x7ec   :  { %3799 = vmatpush3.bf16.msra.mxu0 %v4234_v48  ;;  %3814 = vmatprep.mubr.msk.bf16.mxu0 %vm4383_vm0, %v4382_v0 }
 0x7ed   :  { %3800 = vmatprep.subr.bf16.mxu0 %v4382_v0 }
 0x7f0   :  { %3801 = vmatpush3.bf16.msra.mxu0 %v4235_v49 }
 0x7f1   :  { %3802 = vmatprep.subr.bf16.mxu0 %v4382_v0 }
 0x7f4   :  { %3803 = vmatpush3.bf16.msra.mxu0 %v4236_v50 }
 0x7f5   :  { %3804 = vmatprep.subr.bf16.mxu0 %v4382_v0 }
 0x7f8   :  { %3805 = vmatpush3.bf16.msra.mxu0 %v4237_v51 }
 0x7f9   :  { %3806 = vmatprep.subr.bf16.mxu0 %v4382_v0 }
 0x7fc   :  { %3807 = vmatpush3.bf16.msra.mxu0 %v4238_v52 }
 0x7fd   :  { %3808 = vmatprep.subr.bf16.mxu0 %v4382_v0 }
 0x800   :  { %3809 = vmatpush3.bf16.msra.mxu0 %v4239_v53 }
 0x801   :  { %3810 = vmatprep.subr.bf16.mxu0 %v4382_v0 }
 0x804   :  { %3811 = vmatpush3.bf16.msra.mxu0 %v4240_v54 }
 0x805   :  { %3812 = vmatprep.subr.bf16.mxu0 %v4382_v0 }
 0x808   :  { %3813 = vmatpush3.bf16.msra.mxu0 %v4241_v55  ;;  %v4258_v55 = vld [vmem:[#allocation2 + $0x200] sm:$0xff]  }
 0x809   :  { %3844 = vmatprep.subr.bf16.mxu0 %v4382_v0 }
 0x8be   :  { %v829_v57 = vpop.f32.mrb[16].mxu0 }
 0x8bf   :  { %v830_v58 = vadd.f32 %v3281_v56, %v829_v57  ;;  %v3796_v59 = vpop.f32.mrb[17].mxu0  ;;  %v4260_v57 = vld [vmem:[#allocation2 + $0x210] sm:$0xff]  }
 0x8c0   :  { %v832_v60 = vpop.f32.mrb[18].mxu0  ;;  %v4262_v59 = vld [vmem:[#allocation2 + $0x220] sm:$0xff]  }
 0x8c1   :  { %v833_v61 = vadd.f32 %v3281_v56, %v832_v60  ;;  %v3797_v62 = vpop.f32.mrb[19].mxu0  ;;  %v836_v63 = vmax.f32 %v830_v58, 0.0  ;;  %v4259_v56 = vld [vmem:[#allocation2 + $0x208] sm:$0xff]   ;;  %v4261_v58 = vld [vmem:[#allocation2 + $0x218] sm:$0xff]  }
 0x8c2   :  { %v4263_v60 = vld [vmem:[#allocation2 + $0x228] sm:$0xff]   ;;  %v4265_v62 = vld [vmem:[#allocation2 + $0x238] sm:$0xff]  }
 0x8c3   :  { %v837_v1 = vmax.f32 %v833_v61, 0.0  ;;  %v4264_v61 = vld [vmem:[#allocation2 + $0x230] sm:$0xff]  }
 0x8c5   :  { %v838_v2 = vpack.c.bf16 %v837_v1, %v836_v63  ;;  %v3314_v63 = vld [vmem:[%s4806_s3 + $0x7] ss:$0 sm:$0xff] }
 0x8c7   :  { %3815 = vmatmul.mubr.bf16.vlgmr.msra.gmra.mrb[20].mxu0 %v838_v2 }
 0x8c8   :  { %3846 = vmatprep.mubr.msk.bf16.mxu0 %vm4383_vm0, %v4382_v0 }
 0x99a   :  { %v938_v3 = vpop.f32.mrb[20].mxu0 }
 0x99b   :  { %v3816_v4 = vpop.f32.mrb[21].mxu0 }
 0x99c   :  { %v941_v5 = vpop.f32.mrb[22].mxu0 }
 0x99d   :  { %v945_v6 = vpack.c.bf16 %v941_v5, %v938_v3  ;;  %v3817_v7 = vpop.f32.mrb[23].mxu0 }
 0x99f   :  { %3819 = vmatpush3.bf16.msra.mxu1 %v945_v6 }
 0x9a0   :  { %3824 = vmatprep.subr.bf16.mxu1 %v4382_v0 }
 0x9a2   :  { %3821 = vmatmul.mubr.msk.bf16.vlgmr.msra.gmra.mrb[20].mxu1 %vm155_vm1, %v4446_v17 }
 0x9a3   :  { %3825 = vmatpush3.bf16.msra.mxu1 %v4242_v8  ;;  %3840 = vmatprep.mubr.msk.bf16.mxu1 %vm4383_vm0, %v4382_v0 }
 0x9a4   :  { %3826 = vmatprep.subr.bf16.mxu1 %v4382_v0 }
 0x9a7   :  { %3827 = vmatpush3.bf16.msra.mxu1 %v4243_v9 }
 0x9a8   :  { %3828 = vmatprep.subr.bf16.mxu1 %v4382_v0 }
 0x9ab   :  { %3829 = vmatpush3.bf16.msra.mxu1 %v4244_v10 }
 0x9ac   :  { %3830 = vmatprep.subr.bf16.mxu1 %v4382_v0 }
 0x9af   :  { %3831 = vmatpush3.bf16.msra.mxu1 %v4245_v11 }
 0x9b0   :  { %3832 = vmatprep.subr.bf16.mxu1 %v4382_v0 }
 0x9b3   :  { %3833 = vmatpush3.bf16.msra.mxu1 %v4246_v12 }
 0x9b4   :  { %3834 = vmatprep.subr.bf16.mxu1 %v4382_v0 }
 0x9b7   :  { %3835 = vmatpush3.bf16.msra.mxu1 %v4247_v13 }
 0x9b8   :  { %3836 = vmatprep.subr.bf16.mxu1 %v4382_v0 }
 0x9bb   :  { %3837 = vmatpush3.bf16.msra.mxu1 %v4248_v14 }
 0x9bc   :  { %3838 = vmatprep.subr.bf16.mxu1 %v4382_v0 }
 0x9bf   :  { %3839 = vmatpush3.bf16.msra.mxu1 %v4249_v15  ;;  %v4266_v15 = vld [vmem:[#allocation2 + $0x240] sm:$0xff]  }
 0x9c0   :  { %3870 = vmatprep.subr.bf16.mxu1 %v4382_v0 }
 0xa75   :  { %v988_v18 = vpop.f32.mrb[20].mxu1 }
 0xa76   :  { %v989_v19 = vadd.f32 %v3292_v16, %v988_v18  ;;  %v3822_v20 = vpop.f32.mrb[21].mxu1  ;;  %v4268_v18 = vld [vmem:[#allocation2 + $0x250] sm:$0xff]  }
 0xa77   :  { %v991_v21 = vpop.f32.mrb[22].mxu1  ;;  %v4270_v20 = vld [vmem:[#allocation2 + $0x260] sm:$0xff]  }
 0xa78   :  { %v992_v22 = vadd.f32 %v3292_v16, %v991_v21  ;;  %v3823_v23 = vpop.f32.mrb[23].mxu1  ;;  %v995_v24 = vmax.f32 %v989_v19, 0.0  ;;  %v4267_v16 = vld [vmem:[#allocation2 + $0x248] sm:$0xff]   ;;  %v4269_v19 = vld [vmem:[#allocation2 + $0x258] sm:$0xff]  }
 0xa79   :  { %v4271_v21 = vld [vmem:[#allocation2 + $0x268] sm:$0xff]   ;;  %v4273_v23 = vld [vmem:[#allocation2 + $0x278] sm:$0xff]  }
 0xa7a   :  { %v996_v25 = vmax.f32 %v992_v22, 0.0  ;;  %v4272_v22 = vld [vmem:[#allocation2 + $0x270] sm:$0xff]  }
 0xa7c   :  { %v997_v26 = vpack.c.bf16 %v996_v25, %v995_v24  ;;  %v3325_v24 = vld [vmem:[%s4806_s3 + $0x8] ss:$0 sm:$0xff] }
 0xa7e   :  { %3841 = vmatmul.mubr.bf16.vlgmr.msra.gmra.mrb[24].mxu1 %v997_v26 }
 0xa7f   :  { %3872 = vmatprep.mubr.msk.bf16.mxu1 %vm4383_vm0, %v4382_v0 }
 0xb51   :  { %v1097_v27 = vpop.f32.mrb[24].mxu1 }
 0xb52   :  { %v3842_v28 = vpop.f32.mrb[25].mxu1 }
 0xb53   :  { %v1100_v29 = vpop.f32.mrb[26].mxu1 }
 0xb54   :  { %v1104_v30 = vpack.c.bf16 %v1100_v29, %v1097_v27  ;;  %v3843_v31 = vpop.f32.mrb[27].mxu1 }
 0xb56   :  { %3845 = vmatpush3.bf16.msra.mxu0 %v1104_v30 }
 0xb57   :  { %3850 = vmatprep.subr.bf16.mxu0 %v4382_v0 }
 0xb59   :  { %3847 = vmatmul.mubr.msk.bf16.vlgmr.msra.gmra.mrb[24].mxu0 %vm155_vm1, %v4446_v17 }
 0xb5a   :  { %3851 = vmatpush3.bf16.msra.mxu0 %v4250_v32  ;;  %3866 = vmatprep.mubr.msk.bf16.mxu0 %vm4383_vm0, %v4382_v0 }
 0xb5b   :  { %3852 = vmatprep.subr.bf16.mxu0 %v4382_v0 }
 0xb5e   :  { %3853 = vmatpush3.bf16.msra.mxu0 %v4251_v33 }
 0xb5f   :  { %3854 = vmatprep.subr.bf16.mxu0 %v4382_v0 }
 0xb62   :  { %3855 = vmatpush3.bf16.msra.mxu0 %v4252_v34 }
 0xb63   :  { %3856 = vmatprep.subr.bf16.mxu0 %v4382_v0 }
 0xb66   :  { %3857 = vmatpush3.bf16.msra.mxu0 %v4253_v35 }
 0xb67   :  { %3858 = vmatprep.subr.bf16.mxu0 %v4382_v0 }
 0xb6a   :  { %3859 = vmatpush3.bf16.msra.mxu0 %v4254_v36 }
 0xb6b   :  { %3860 = vmatprep.subr.bf16.mxu0 %v4382_v0 }
 0xb6e   :  { %3861 = vmatpush3.bf16.msra.mxu0 %v4255_v37 }
 0xb6f   :  { %3862 = vmatprep.subr.bf16.mxu0 %v4382_v0 }
 0xb72   :  { %3863 = vmatpush3.bf16.msra.mxu0 %v4256_v38 }
 0xb73   :  { %3864 = vmatprep.subr.bf16.mxu0 %v4382_v0 }
 0xb76   :  { %3865 = vmatpush3.bf16.msra.mxu0 %v4257_v39  ;;  %v4274_v39 = vld [vmem:[#allocation2 + $0x280] sm:$0xff]  }
 0xb77   :  { %3896 = vmatprep.subr.bf16.mxu0 %v4382_v0 }
 0xc2c   :  { %v1147_v41 = vpop.f32.mrb[24].mxu0 }
 0xc2d   :  { %v1148_v42 = vadd.f32 %v3303_v40, %v1147_v41  ;;  %v3848_v43 = vpop.f32.mrb[25].mxu0  ;;  %v4276_v41 = vld [vmem:[#allocation2 + $0x290] sm:$0xff]  }
 0xc2e   :  { %v1150_v44 = vpop.f32.mrb[26].mxu0  ;;  %v4278_v43 = vld [vmem:[#allocation2 + $0x2a0] sm:$0xff]  }
 0xc2f   :  { %v1151_v45 = vadd.f32 %v3303_v40, %v1150_v44  ;;  %v3849_v46 = vpop.f32.mrb[27].mxu0  ;;  %v1154_v47 = vmax.f32 %v1148_v42, 0.0  ;;  %v4275_v40 = vld [vmem:[#allocation2 + $0x288] sm:$0xff]   ;;  %v4277_v42 = vld [vmem:[#allocation2 + $0x298] sm:$0xff]  }
 0xc30   :  { %v4279_v44 = vld [vmem:[#allocation2 + $0x2a8] sm:$0xff]   ;;  %v4281_v46 = vld [vmem:[#allocation2 + $0x2b8] sm:$0xff]  }
 0xc31   :  { %v1155_v48 = vmax.f32 %v1151_v45, 0.0  ;;  %v4280_v45 = vld [vmem:[#allocation2 + $0x2b0] sm:$0xff]  }
 0xc33   :  { %v1156_v49 = vpack.c.bf16 %v1155_v48, %v1154_v47  ;;  %v3336_v47 = vld [vmem:[%s4806_s3 + $0x9] ss:$0 sm:$0xff] }
 0xc35   :  { %3867 = vmatmul.mubr.bf16.vlgmr.msra.gmra.mrb[28].mxu0 %v1156_v49 }
 0xc36   :  { %3898 = vmatprep.mubr.msk.bf16.mxu0 %vm4383_vm0, %v4382_v0 }
 0xd08   :  { %v1256_v50 = vpop.f32.mrb[28].mxu0 }
 0xd09   :  { %v3868_v51 = vpop.f32.mrb[29].mxu0 }
 0xd0a   :  { %v1259_v52 = vpop.f32.mrb[30].mxu0 }
 0xd0b   :  { %v1263_v53 = vpack.c.bf16 %v1259_v52, %v1256_v50  ;;  %v3869_v54 = vpop.f32.mrb[31].mxu0 }
 0xd0d   :  { %3871 = vmatpush3.bf16.msra.mxu1 %v1263_v53 }
 0xd0e   :  { %3876 = vmatprep.subr.bf16.mxu1 %v4382_v0 }
 0xd10   :  { %3873 = vmatmul.mubr.msk.bf16.vlgmr.msra.gmra.mrb[28].mxu1 %vm155_vm1, %v4446_v17 }
 0xd11   :  { %3877 = vmatpush3.bf16.msra.mxu1 %v4258_v55  ;;  %3892 = vmatprep.mubr.msk.bf16.mxu1 %vm4383_vm0, %v4382_v0 }
 0xd12   :  { %3878 = vmatprep.subr.bf16.mxu1 %v4382_v0 }
 0xd15   :  { %3879 = vmatpush3.bf16.msra.mxu1 %v4259_v56 }
 0xd16   :  { %3880 = vmatprep.subr.bf16.mxu1 %v4382_v0 }
 0xd19   :  { %3881 = vmatpush3.bf16.msra.mxu1 %v4260_v57 }
 0xd1a   :  { %3882 = vmatprep.subr.bf16.mxu1 %v4382_v0 }
 0xd1d   :  { %3883 = vmatpush3.bf16.msra.mxu1 %v4261_v58 }
 0xd1e   :  { %3884 = vmatprep.subr.bf16.mxu1 %v4382_v0 }
 0xd21   :  { %3885 = vmatpush3.bf16.msra.mxu1 %v4262_v59 }
 0xd22   :  { %3886 = vmatprep.subr.bf16.mxu1 %v4382_v0 }
 0xd25   :  { %3887 = vmatpush3.bf16.msra.mxu1 %v4263_v60 }
 0xd26   :  { %3888 = vmatprep.subr.bf16.mxu1 %v4382_v0 }
 0xd29   :  { %3889 = vmatpush3.bf16.msra.mxu1 %v4264_v61 }
 0xd2a   :  { %3890 = vmatprep.subr.bf16.mxu1 %v4382_v0 }
 0xd2d   :  { %3891 = vmatpush3.bf16.msra.mxu1 %v4265_v62  ;;  %v4282_v62 = vld [vmem:[#allocation2 + $0x2c0] sm:$0xff]  }
 0xd2e   :  { %3922 = vmatprep.subr.bf16.mxu1 %v4382_v0 }
 0xde3   :  { %v1306_v1 = vpop.f32.mrb[28].mxu1 }
 0xde4   :  { %v1307_v2 = vadd.f32 %v3314_v63, %v1306_v1  ;;  %v3874_v3 = vpop.f32.mrb[29].mxu1  ;;  %v4284_v1 = vld [vmem:[#allocation2 + $0x2d0] sm:$0xff]  }
 0xde5   :  { %v1309_v4 = vpop.f32.mrb[30].mxu1  ;;  %v4286_v3 = vld [vmem:[#allocation2 + $0x2e0] sm:$0xff]  }
 0xde6   :  { %v1310_v5 = vadd.f32 %v3314_v63, %v1309_v4  ;;  %v3875_v6 = vpop.f32.mrb[31].mxu1  ;;  %v1313_v7 = vmax.f32 %v1307_v2, 0.0  ;;  %v4283_v63 = vld [vmem:[#allocation2 + $0x2c8] sm:$0xff]   ;;  %v4285_v2 = vld [vmem:[#allocation2 + $0x2d8] sm:$0xff]  }
 0xde7   :  { %v4287_v4 = vld [vmem:[#allocation2 + $0x2e8] sm:$0xff]   ;;  %v4289_v6 = vld [vmem:[#allocation2 + $0x2f8] sm:$0xff]  }
 0xde8   :  { %v1314_v8 = vmax.f32 %v1310_v5, 0.0  ;;  %v4288_v5 = vld [vmem:[#allocation2 + $0x2f0] sm:$0xff]  }
 0xdea   :  { %v1315_v9 = vpack.c.bf16 %v1314_v8, %v1313_v7  ;;  %v3347_v7 = vld [vmem:[%s4806_s3 + $0xa] ss:$0 sm:$0xff] }
 0xdec   :  { %3893 = vmatmul.mubr.bf16.vlgmr.msra.gmra.mrb[32].mxu1 %v1315_v9 }
 0xded   :  { %3924 = vmatprep.mubr.msk.bf16.mxu1 %vm4383_vm0, %v4382_v0 }
 0xebf   :  { %v1415_v10 = vpop.f32.mrb[32].mxu1 }
 0xec0   :  { %v3894_v11 = vpop.f32.mrb[33].mxu1 }
 0xec1   :  { %v1418_v12 = vpop.f32.mrb[34].mxu1 }
 0xec2   :  { %v1422_v13 = vpack.c.bf16 %v1418_v12, %v1415_v10  ;;  %v3895_v14 = vpop.f32.mrb[35].mxu1 }
 0xec4   :  { %3897 = vmatpush3.bf16.msra.mxu0 %v1422_v13 }
 0xec5   :  { %3902 = vmatprep.subr.bf16.mxu0 %v4382_v0 }
 0xec7   :  { %3899 = vmatmul.mubr.msk.bf16.vlgmr.msra.gmra.mrb[32].mxu0 %vm155_vm1, %v4446_v17 }
 0xec8   :  { %3903 = vmatpush3.bf16.msra.mxu0 %v4266_v15  ;;  %3918 = vmatprep.mubr.msk.bf16.mxu0 %vm4383_vm0, %v4382_v0 }
 0xec9   :  { %3904 = vmatprep.subr.bf16.mxu0 %v4382_v0 }
 0xecc   :  { %3905 = vmatpush3.bf16.msra.mxu0 %v4267_v16 }
 0xecd   :  { %3906 = vmatprep.subr.bf16.mxu0 %v4382_v0 }
 0xed0   :  { %3907 = vmatpush3.bf16.msra.mxu0 %v4268_v18 }
 0xed1   :  { %3908 = vmatprep.subr.bf16.mxu0 %v4382_v0 }
 0xed4   :  { %3909 = vmatpush3.bf16.msra.mxu0 %v4269_v19 }
 0xed5   :  { %3910 = vmatprep.subr.bf16.mxu0 %v4382_v0 }
 0xed8   :  { %3911 = vmatpush3.bf16.msra.mxu0 %v4270_v20 }
 0xed9   :  { %3912 = vmatprep.subr.bf16.mxu0 %v4382_v0 }
 0xedc   :  { %3913 = vmatpush3.bf16.msra.mxu0 %v4271_v21 }
 0xedd   :  { %3914 = vmatprep.subr.bf16.mxu0 %v4382_v0 }
 0xee0   :  { %3915 = vmatpush3.bf16.msra.mxu0 %v4272_v22 }
 0xee1   :  { %3916 = vmatprep.subr.bf16.mxu0 %v4382_v0 }
 0xee4   :  { %3917 = vmatpush3.bf16.msra.mxu0 %v4273_v23  ;;  %v4290_v23 = vld [vmem:[#allocation2 + $0x300] sm:$0xff]  }
 0xee5   :  { %3948 = vmatprep.subr.bf16.mxu0 %v4382_v0 }
 0xf9a   :  { %v1465_v25 = vpop.f32.mrb[32].mxu0 }
 0xf9b   :  { %v1466_v26 = vadd.f32 %v3325_v24, %v1465_v25  ;;  %v3900_v27 = vpop.f32.mrb[33].mxu0  ;;  %v4292_v25 = vld [vmem:[#allocation2 + $0x310] sm:$0xff]  }
 0xf9c   :  { %v1468_v28 = vpop.f32.mrb[34].mxu0  ;;  %v4294_v27 = vld [vmem:[#allocation2 + $0x320] sm:$0xff]  }
 0xf9d   :  { %v1469_v29 = vadd.f32 %v3325_v24, %v1468_v28  ;;  %v3901_v30 = vpop.f32.mrb[35].mxu0  ;;  %v1472_v31 = vmax.f32 %v1466_v26, 0.0  ;;  %v4291_v24 = vld [vmem:[#allocation2 + $0x308] sm:$0xff]   ;;  %v4293_v26 = vld [vmem:[#allocation2 + $0x318] sm:$0xff]   ;;  %v4296_v28 = vld [vmem:[#allocation2 + $0x330] sm:$0xff]  }
 0xf9e   :  { %v3358_v30 = vld [vmem:[%s4806_s3 + $0xb] ss:$0 sm:$0xff] }
 0xf9f   :  { %v1473_v32 = vmax.f32 %v1469_v29, 0.0  ;;  %v4297_v29 = vld [vmem:[#allocation2 + $0x338] sm:$0xff]  }
 0xfa1   :  { %v1474_v33 = vpack.c.bf16 %v1473_v32, %v1472_v31 }
 0xfa3   :  { %3919 = vmatmul.mubr.bf16.vlgmr.msra.gmra.mrb[36].mxu0 %v1474_v33 }
 0xfa4   :  { %3950 = vmatprep.mubr.msk.bf16.mxu0 %vm4383_vm0, %v4382_v0 }
0x1076   :  { %v1574_v34 = vpop.f32.mrb[36].mxu0 }
0x1077   :  { %v3920_v35 = vpop.f32.mrb[37].mxu0 }
0x1078   :  { %v1577_v36 = vpop.f32.mrb[38].mxu0 }
0x1079   :  { %v1581_v37 = vpack.c.bf16 %v1577_v36, %v1574_v34  ;;  %v3921_v38 = vpop.f32.mrb[39].mxu0 }
0x107b   :  { %3923 = vmatpush3.bf16.msra.mxu1 %v1581_v37 }
0x107c   :  { %3928 = vmatprep.subr.bf16.mxu1 %v4382_v0 }
0x107e   :  { %3925 = vmatmul.mubr.msk.bf16.vlgmr.msra.gmra.mrb[36].mxu1 %vm155_vm1, %v4446_v17 }
0x107f   :  { %3929 = vmatpush3.bf16.msra.mxu1 %v4274_v39  ;;  %3944 = vmatprep.mubr.msk.bf16.mxu1 %vm4383_vm0, %v4382_v0 }
0x1080   :  { %3930 = vmatprep.subr.bf16.mxu1 %v4382_v0 }
0x1083   :  { %3931 = vmatpush3.bf16.msra.mxu1 %v4275_v40 }
0x1084   :  { %3932 = vmatprep.subr.bf16.mxu1 %v4382_v0 }
0x1087   :  { %3933 = vmatpush3.bf16.msra.mxu1 %v4276_v41 }
0x1088   :  { %3934 = vmatprep.subr.bf16.mxu1 %v4382_v0 }
0x108b   :  { %3935 = vmatpush3.bf16.msra.mxu1 %v4277_v42 }
0x108c   :  { %3936 = vmatprep.subr.bf16.mxu1 %v4382_v0 }
0x108f   :  { %3937 = vmatpush3.bf16.msra.mxu1 %v4278_v43 }
0x1090   :  { %3938 = vmatprep.subr.bf16.mxu1 %v4382_v0 }
0x1093   :  { %3939 = vmatpush3.bf16.msra.mxu1 %v4279_v44 }
0x1094   :  { %3940 = vmatprep.subr.bf16.mxu1 %v4382_v0 }
0x1097   :  { %3941 = vmatpush3.bf16.msra.mxu1 %v4280_v45  ;;  %v4298_v45 = vld [vmem:[#allocation2 + $0x340] sm:$0xff]  }
0x1098   :  { %3942 = vmatprep.subr.bf16.mxu1 %v4382_v0 }
0x109b   :  { %3943 = vmatpush3.bf16.msra.mxu1 %v4281_v46  ;;  %v4668_v46 = vld [vmem:[%s4803_s0] sm:$0xff]  }
0x109c   :  { %3974 = vmatprep.subr.bf16.mxu1 %v4382_v0 }
0x1151   :  { %v1624_v48 = vpop.f32.mrb[36].mxu1 }
0x1152   :  { %v1625_v49 = vadd.f32 %v3336_v47, %v1624_v48  ;;  %v3926_v50 = vpop.f32.mrb[37].mxu1  ;;  %v4300_v48 = vld [vmem:[#allocation2 + $0x350] sm:$0xff]  }
0x1153   :  { %v1627_v51 = vpop.f32.mrb[38].mxu1  ;;  %v4302_v50 = vld [vmem:[#allocation2 + $0x360] sm:$0xff]  }
0x1154   :  { %v1628_v52 = vadd.f32 %v3336_v47, %v1627_v51  ;;  %v3927_v53 = vpop.f32.mrb[39].mxu1  ;;  %v1631_v54 = vmax.f32 %v1625_v49, 0.0  ;;  %v4299_v47 = vld [vmem:[#allocation2 + $0x348] sm:$0xff]   ;;  %v4301_v49 = vld [vmem:[#allocation2 + $0x358] sm:$0xff]  }
0x1155   :  { %v4303_v51 = vld [vmem:[#allocation2 + $0x368] sm:$0xff]   ;;  %v4305_v53 = vld [vmem:[#allocation2 + $0x378] sm:$0xff]  }
0x1156   :  { %v1632_v55 = vmax.f32 %v1628_v52, 0.0  ;;  %v4304_v52 = vld [vmem:[#allocation2 + $0x370] sm:$0xff]  }
0x1158   :  { %v1633_v56 = vpack.c.bf16 %v1632_v55, %v1631_v54  ;;  %v3369_v54 = vld [vmem:[%s4806_s3 + $0xc] ss:$0 sm:$0xff] }
0x115a   :  { %3945 = vmatmul.mubr.bf16.vlgmr.msra.gmra.mrb[40].mxu1 %v1633_v56 }
0x115b   :  { %3976 = vmatprep.mubr.msk.bf16.mxu1 %vm4383_vm0, %v4382_v0 }
0x122d   :  { %v1733_v57 = vpop.f32.mrb[40].mxu1 }
0x122e   :  { %v3946_v58 = vpop.f32.mrb[41].mxu1 }
0x122f   :  { %v1736_v59 = vpop.f32.mrb[42].mxu1 }
0x1230   :  { %v1740_v60 = vpack.c.bf16 %v1736_v59, %v1733_v57  ;;  %v3947_v61 = vpop.f32.mrb[43].mxu1 }
0x1232   :  { %3949 = vmatpush3.bf16.msra.mxu0 %v1740_v60 }
0x1233   :  { %3954 = vmatprep.subr.bf16.mxu0 %v4382_v0 }
0x1235   :  { %3951 = vmatmul.mubr.msk.bf16.vlgmr.msra.gmra.mrb[40].mxu0 %vm155_vm1, %v4446_v17 }
0x1236   :  { %3955 = vmatpush3.bf16.msra.mxu0 %v4282_v62  ;;  %3970 = vmatprep.mubr.msk.bf16.mxu0 %vm4383_vm0, %v4382_v0 }
0x1237   :  { %3956 = vmatprep.subr.bf16.mxu0 %v4382_v0 }
0x123a   :  { %3957 = vmatpush3.bf16.msra.mxu0 %v4283_v63 }
0x123b   :  { %3958 = vmatprep.subr.bf16.mxu0 %v4382_v0 }
0x123e   :  { %3959 = vmatpush3.bf16.msra.mxu0 %v4284_v1 }
0x123f   :  { %3960 = vmatprep.subr.bf16.mxu0 %v4382_v0 }
0x1242   :  { %3961 = vmatpush3.bf16.msra.mxu0 %v4285_v2 }
0x1243   :  { %3962 = vmatprep.subr.bf16.mxu0 %v4382_v0 }
0x1246   :  { %3963 = vmatpush3.bf16.msra.mxu0 %v4286_v3 }
0x1247   :  { %3964 = vmatprep.subr.bf16.mxu0 %v4382_v0 }
0x124a   :  { %3965 = vmatpush3.bf16.msra.mxu0 %v4287_v4 }
0x124b   :  { %3966 = vmatprep.subr.bf16.mxu0 %v4382_v0 }
0x124e   :  { %3967 = vmatpush3.bf16.msra.mxu0 %v4288_v5 }
0x124f   :  { %3968 = vmatprep.subr.bf16.mxu0 %v4382_v0 }
0x1252   :  { %3969 = vmatpush3.bf16.msra.mxu0 %v4289_v6  ;;  %v4306_v6 = vld [vmem:[#allocation2 + $0x380] sm:$0xff]  }
0x1253   :  { %4000 = vmatprep.subr.bf16.mxu0 %v4382_v0 }
0x1308   :  { %v1783_v8 = vpop.f32.mrb[40].mxu0 }
0x1309   :  { %v1784_v9 = vadd.f32 %v3347_v7, %v1783_v8  ;;  %v3952_v10 = vpop.f32.mrb[41].mxu0  ;;  %v4308_v8 = vld [vmem:[#allocation2 + $0x390] sm:$0xff]  }
0x130a   :  { %v1786_v11 = vpop.f32.mrb[42].mxu0  ;;  %v4310_v10 = vld [vmem:[#allocation2 + $0x3a0] sm:$0xff]  }
0x130b   :  { %v1787_v12 = vadd.f32 %v3347_v7, %v1786_v11  ;;  %v3953_v13 = vpop.f32.mrb[43].mxu0  ;;  %v1790_v14 = vmax.f32 %v1784_v9, 0.0  ;;  %v4307_v7 = vld [vmem:[#allocation2 + $0x388] sm:$0xff]   ;;  %v4309_v9 = vld [vmem:[#allocation2 + $0x398] sm:$0xff]  }
0x130c   :  { %v4311_v11 = vld [vmem:[#allocation2 + $0x3a8] sm:$0xff]   ;;  %v4313_v13 = vld [vmem:[#allocation2 + $0x3b8] sm:$0xff]  }
0x130d   :  { %v1791_v15 = vmax.f32 %v1787_v12, 0.0  ;;  %v4312_v12 = vld [vmem:[#allocation2 + $0x3b0] sm:$0xff]  }
0x130f   :  { %v1792_v16 = vpack.c.bf16 %v1791_v15, %v1790_v14  ;;  %v3380_v14 = vld [vmem:[%s4806_s3 + $0xd] ss:$0 sm:$0xff] }
0x1311   :  { %3971 = vmatmul.mubr.bf16.vlgmr.msra.gmra.mrb[44].mxu0 %v1792_v16 }
0x1312   :  { %4002 = vmatprep.mubr.msk.bf16.mxu0 %vm4383_vm0, %v4382_v0 }
0x13e4   :  { %v1892_v18 = vpop.f32.mrb[44].mxu0 }
0x13e5   :  { %v3972_v19 = vpop.f32.mrb[45].mxu0 }
0x13e6   :  { %v1895_v20 = vpop.f32.mrb[46].mxu0 }
0x13e7   :  { %v1899_v21 = vpack.c.bf16 %v1895_v20, %v1892_v18  ;;  %v3973_v22 = vpop.f32.mrb[47].mxu0 }
0x13e9   :  { %3975 = vmatpush3.bf16.msra.mxu1 %v1899_v21 }
0x13ea   :  { %3980 = vmatprep.subr.bf16.mxu1 %v4382_v0 }
0x13ec   :  { %3977 = vmatmul.mubr.msk.bf16.vlgmr.msra.gmra.mrb[44].mxu1 %vm155_vm1, %v4446_v17  ;;  %v4295_v17 = vld [vmem:[#allocation2 + $0x328] sm:$0xff]  }
0x13ed   :  { %3981 = vmatpush3.bf16.msra.mxu1 %v4290_v23  ;;  %3996 = vmatprep.mubr.msk.bf16.mxu1 %vm4383_vm0, %v4382_v0 }
0x13ee   :  { %3982 = vmatprep.subr.bf16.mxu1 %v4382_v0 }
0x13f1   :  { %3983 = vmatpush3.bf16.msra.mxu1 %v4291_v24 }
0x13f2   :  { %3984 = vmatprep.subr.bf16.mxu1 %v4382_v0 }
0x13f5   :  { %3985 = vmatpush3.bf16.msra.mxu1 %v4292_v25 }
0x13f6   :  { %3986 = vmatprep.subr.bf16.mxu1 %v4382_v0 }
0x13f9   :  { %3987 = vmatpush3.bf16.msra.mxu1 %v4293_v26 }
0x13fa   :  { %3988 = vmatprep.subr.bf16.mxu1 %v4382_v0 }
0x13fd   :  { %3989 = vmatpush3.bf16.msra.mxu1 %v4294_v27 }
0x13fe   :  { %3990 = vmatprep.subr.bf16.mxu1 %v4382_v0 }
0x1401   :  { %3991 = vmatpush3.bf16.msra.mxu1 %v4295_v17 }
0x1402   :  { %3992 = vmatprep.subr.bf16.mxu1 %v4382_v0 }
0x1405   :  { %3993 = vmatpush3.bf16.msra.mxu1 %v4296_v28 }
0x1406   :  { %3994 = vmatprep.subr.bf16.mxu1 %v4382_v0 }
0x1409   :  { %3995 = vmatpush3.bf16.msra.mxu1 %v4297_v29  ;;  %v4314_v29 = vld [vmem:[#allocation2 + $0x3c0] sm:$0xff]  }
0x140a   :  { %4026 = vmatprep.subr.bf16.mxu1 %v4382_v0 }
0x14bf   :  { %v1942_v31 = vpop.f32.mrb[44].mxu1 }
0x14c0   :  { %v1943_v32 = vadd.f32 %v3358_v30, %v1942_v31  ;;  %v3978_v33 = vpop.f32.mrb[45].mxu1  ;;  %v4316_v31 = vld [vmem:[#allocation2 + $0x3d0] sm:$0xff]  }
0x14c1   :  { %v1945_v34 = vpop.f32.mrb[46].mxu1  ;;  %v4318_v33 = vld [vmem:[#allocation2 + $0x3e0] sm:$0xff]  }
0x14c2   :  { %v1946_v35 = vadd.f32 %v3358_v30, %v1945_v34  ;;  %v3979_v36 = vpop.f32.mrb[47].mxu1  ;;  %v1949_v37 = vmax.f32 %v1943_v32, 0.0  ;;  %v4315_v30 = vld [vmem:[#allocation2 + $0x3c8] sm:$0xff]   ;;  %v4317_v32 = vld [vmem:[#allocation2 + $0x3d8] sm:$0xff]  }
0x14c3   :  { %v4319_v34 = vld [vmem:[#allocation2 + $0x3e8] sm:$0xff]   ;;  %v4321_v36 = vld [vmem:[#allocation2 + $0x3f8] sm:$0xff]  }
0x14c4   :  { %v1950_v38 = vmax.f32 %v1946_v35, 0.0  ;;  %v4320_v35 = vld [vmem:[#allocation2 + $0x3f0] sm:$0xff]  }
0x14c6   :  { %v1951_v39 = vpack.c.bf16 %v1950_v38, %v1949_v37  ;;  %v3391_v37 = vld [vmem:[%s4806_s3 + $0xe] ss:$0 sm:$0xff] }
0x14c8   :  { %3997 = vmatmul.mubr.bf16.vlgmr.msra.gmra.mrb[48].mxu1 %v1951_v39 }
0x14c9   :  { %4028 = vmatprep.mubr.msk.bf16.mxu1 %vm4383_vm0, %v4382_v0 }
0x159b   :  { %v2051_v40 = vpop.f32.mrb[48].mxu1 }
0x159c   :  { %v3998_v41 = vpop.f32.mrb[49].mxu1 }
0x159d   :  { %v2054_v42 = vpop.f32.mrb[50].mxu1 }
0x159e   :  { %v2058_v43 = vpack.c.bf16 %v2054_v42, %v2051_v40  ;;  %v3999_v44 = vpop.f32.mrb[51].mxu1 }
0x15a0   :  { %4001 = vmatpush3.bf16.msra.mxu0 %v2058_v43 }
0x15a1   :  { %4006 = vmatprep.subr.bf16.mxu0 %v4382_v0 }
0x15a3   :  { %4003 = vmatmul.mubr.msk.bf16.vlgmr.msra.gmra.mrb[48].mxu0 %vm155_vm1, %v4668_v46 }
0x15a4   :  { %4007 = vmatpush3.bf16.msra.mxu0 %v4298_v45  ;;  %4022 = vmatprep.mubr.msk.bf16.mxu0 %vm4383_vm0, %v4382_v0 }
0x15a5   :  { %4008 = vmatprep.subr.bf16.mxu0 %v4382_v0 }
0x15a8   :  { %4009 = vmatpush3.bf16.msra.mxu0 %v4299_v47 }
0x15a9   :  { %4010 = vmatprep.subr.bf16.mxu0 %v4382_v0 }
0x15ac   :  { %4011 = vmatpush3.bf16.msra.mxu0 %v4300_v48 }
0x15ad   :  { %4012 = vmatprep.subr.bf16.mxu0 %v4382_v0 }
0x15b0   :  { %4013 = vmatpush3.bf16.msra.mxu0 %v4301_v49 }
0x15b1   :  { %4014 = vmatprep.subr.bf16.mxu0 %v4382_v0 }
0x15b4   :  { %4015 = vmatpush3.bf16.msra.mxu0 %v4302_v50 }
0x15b5   :  { %4016 = vmatprep.subr.bf16.mxu0 %v4382_v0 }
0x15b8   :  { %4017 = vmatpush3.bf16.msra.mxu0 %v4303_v51 }
0x15b9   :  { %4018 = vmatprep.subr.bf16.mxu0 %v4382_v0 }
0x15bc   :  { %4019 = vmatpush3.bf16.msra.mxu0 %v4304_v52 }
0x15bd   :  { %4020 = vmatprep.subr.bf16.mxu0 %v4382_v0 }
0x15c0   :  { %4021 = vmatpush3.bf16.msra.mxu0 %v4305_v53  ;;  %v4322_v53 = vld [vmem:[#allocation2 + $0x400] sm:$0xff]  }
0x15c1   :  { %4052 = vmatprep.subr.bf16.mxu0 %v4382_v0 }
0x1676   :  { %v2101_v55 = vpop.f32.mrb[48].mxu0 }
0x1677   :  { %v2102_v56 = vadd.f32 %v3369_v54, %v2101_v55  ;;  %v4004_v57 = vpop.f32.mrb[49].mxu0  ;;  %v4324_v55 = vld [vmem:[#allocation2 + $0x410] sm:$0xff]  }
0x1678   :  { %v2104_v58 = vpop.f32.mrb[50].mxu0  ;;  %v4326_v57 = vld [vmem:[#allocation2 + $0x420] sm:$0xff]  }
0x1679   :  { %v2105_v59 = vadd.f32 %v3369_v54, %v2104_v58  ;;  %v4005_v60 = vpop.f32.mrb[51].mxu0  ;;  %v2108_v61 = vmax.f32 %v2102_v56, 0.0  ;;  %v4323_v54 = vld [vmem:[#allocation2 + $0x408] sm:$0xff]   ;;  %v4325_v56 = vld [vmem:[#allocation2 + $0x418] sm:$0xff]  }
0x167a   :  { %v4327_v58 = vld [vmem:[#allocation2 + $0x428] sm:$0xff]   ;;  %v4329_v60 = vld [vmem:[#allocation2 + $0x438] sm:$0xff]  }
0x167b   :  { %v2109_v62 = vmax.f32 %v2105_v59, 0.0  ;;  %v4328_v59 = vld [vmem:[#allocation2 + $0x430] sm:$0xff]  }
0x167d   :  { %v2110_v63 = vpack.c.bf16 %v2109_v62, %v2108_v61  ;;  %v3402_v61 = vld [vmem:[%s4806_s3 + $0xf] ss:$0 sm:$0xff] }
0x167f   :  { %4023 = vmatmul.mubr.bf16.vlgmr.msra.gmra.mrb[52].mxu0 %v2110_v63 }
0x1680   :  { %4054 = vmatprep.mubr.msk.bf16.mxu0 %vm4383_vm0, %v4382_v0 }
0x1752   :  { %v2210_v1 = vpop.f32.mrb[52].mxu0 }
0x1753   :  { %v4024_v2 = vpop.f32.mrb[53].mxu0 }
0x1754   :  { %v2213_v3 = vpop.f32.mrb[54].mxu0 }
0x1755   :  { %v2217_v4 = vpack.c.bf16 %v2213_v3, %v2210_v1  ;;  %v4025_v5 = vpop.f32.mrb[55].mxu0 }
0x1757   :  { %4027 = vmatpush3.bf16.msra.mxu1 %v2217_v4 }
0x1758   :  { %4032 = vmatprep.subr.bf16.mxu1 %v4382_v0 }
0x175a   :  { %4029 = vmatmul.mubr.msk.bf16.vlgmr.msra.gmra.mrb[52].mxu1 %vm155_vm1, %v4668_v46 }
0x175b   :  { %4033 = vmatpush3.bf16.msra.mxu1 %v4306_v6  ;;  %4048 = vmatprep.mubr.msk.bf16.mxu1 %vm4383_vm0, %v4382_v0 }
0x175c   :  { %4034 = vmatprep.subr.bf16.mxu1 %v4382_v0 }
0x175f   :  { %4035 = vmatpush3.bf16.msra.mxu1 %v4307_v7 }
0x1760   :  { %4036 = vmatprep.subr.bf16.mxu1 %v4382_v0 }
0x1763   :  { %4037 = vmatpush3.bf16.msra.mxu1 %v4308_v8 }
0x1764   :  { %4038 = vmatprep.subr.bf16.mxu1 %v4382_v0 }
0x1767   :  { %4039 = vmatpush3.bf16.msra.mxu1 %v4309_v9 }
0x1768   :  { %4040 = vmatprep.subr.bf16.mxu1 %v4382_v0 }
0x176b   :  { %4041 = vmatpush3.bf16.msra.mxu1 %v4310_v10 }
0x176c   :  { %4042 = vmatprep.subr.bf16.mxu1 %v4382_v0 }
0x176f   :  { %4043 = vmatpush3.bf16.msra.mxu1 %v4311_v11 }
0x1770   :  { %4044 = vmatprep.subr.bf16.mxu1 %v4382_v0 }
0x1773   :  { %4045 = vmatpush3.bf16.msra.mxu1 %v4312_v12 }
0x1774   :  { %4046 = vmatprep.subr.bf16.mxu1 %v4382_v0 }
0x1777   :  { %4047 = vmatpush3.bf16.msra.mxu1 %v4313_v13  ;;  %v4330_v13 = vld [vmem:[#allocation2 + $0x440] sm:$0xff]  }
0x1778   :  { %4078 = vmatprep.subr.bf16.mxu1 %v4382_v0 }
0x182d   :  { %v2260_v15 = vpop.f32.mrb[52].mxu1 }
0x182e   :  { %v2261_v16 = vadd.f32 %v3380_v14, %v2260_v15  ;;  %v4030_v18 = vpop.f32.mrb[53].mxu1  ;;  %v4332_v15 = vld [vmem:[#allocation2 + $0x450] sm:$0xff]  }
0x182f   :  { %v2263_v19 = vpop.f32.mrb[54].mxu1  ;;  %v4334_v18 = vld [vmem:[#allocation2 + $0x460] sm:$0xff]  }
0x1830   :  { %v2264_v20 = vadd.f32 %v3380_v14, %v2263_v19  ;;  %v4031_v21 = vpop.f32.mrb[55].mxu1  ;;  %v2267_v22 = vmax.f32 %v2261_v16, 0.0  ;;  %v4331_v14 = vld [vmem:[#allocation2 + $0x448] sm:$0xff]   ;;  %v4333_v16 = vld [vmem:[#allocation2 + $0x458] sm:$0xff]  }
0x1831   :  { %v4335_v19 = vld [vmem:[#allocation2 + $0x468] sm:$0xff]   ;;  %v4337_v21 = vld [vmem:[#allocation2 + $0x478] sm:$0xff]  }
0x1832   :  { %v2268_v23 = vmax.f32 %v2264_v20, 0.0  ;;  %v4336_v20 = vld [vmem:[#allocation2 + $0x470] sm:$0xff]  }
0x1834   :  { %v2269_v24 = vpack.c.bf16 %v2268_v23, %v2267_v22  ;;  %v3413_v22 = vld [vmem:[%s4806_s3 + $0x10] ss:$0 sm:$0xff] }
0x1836   :  { %4049 = vmatmul.mubr.bf16.vlgmr.msra.gmra.mrb[56].mxu1 %v2269_v24 }
0x1837   :  { %4080 = vmatprep.mubr.msk.bf16.mxu1 %vm4383_vm0, %v4382_v0 }
0x1909   :  { %v2369_v25 = vpop.f32.mrb[56].mxu1 }
0x190a   :  { %v4050_v26 = vpop.f32.mrb[57].mxu1 }
0x190b   :  { %v2372_v27 = vpop.f32.mrb[58].mxu1 }
0x190c   :  { %v2376_v17 = vpack.c.bf16 %v2372_v27, %v2369_v25  ;;  %v4051_v28 = vpop.f32.mrb[59].mxu1 }
0x190e   :  { %4053 = vmatpush3.bf16.msra.mxu0 %v2376_v17 }
0x190f   :  { %4058 = vmatprep.subr.bf16.mxu0 %v4382_v0 }
0x1911   :  { %4055 = vmatmul.mubr.msk.bf16.vlgmr.msra.gmra.mrb[56].mxu0 %vm155_vm1, %v4668_v46 }
0x1912   :  { %4059 = vmatpush3.bf16.msra.mxu0 %v4314_v29  ;;  %4074 = vmatprep.mubr.msk.bf16.mxu0 %vm4383_vm0, %v4382_v0 }
0x1913   :  { %4060 = vmatprep.subr.bf16.mxu0 %v4382_v0 }
0x1916   :  { %4061 = vmatpush3.bf16.msra.mxu0 %v4315_v30 }
0x1917   :  { %4062 = vmatprep.subr.bf16.mxu0 %v4382_v0 }
0x191a   :  { %4063 = vmatpush3.bf16.msra.mxu0 %v4316_v31 }
0x191b   :  { %4064 = vmatprep.subr.bf16.mxu0 %v4382_v0 }
0x191e   :  { %4065 = vmatpush3.bf16.msra.mxu0 %v4317_v32 }
0x191f   :  { %4066 = vmatprep.subr.bf16.mxu0 %v4382_v0 }
0x1922   :  { %4067 = vmatpush3.bf16.msra.mxu0 %v4318_v33 }
0x1923   :  { %4068 = vmatprep.subr.bf16.mxu0 %v4382_v0 }
0x1926   :  { %4069 = vmatpush3.bf16.msra.mxu0 %v4319_v34 }
0x1927   :  { %4070 = vmatprep.subr.bf16.mxu0 %v4382_v0 }
0x192a   :  { %4071 = vmatpush3.bf16.msra.mxu0 %v4320_v35 }
0x192b   :  { %4072 = vmatprep.subr.bf16.mxu0 %v4382_v0 }
0x192e   :  { %4073 = vmatpush3.bf16.msra.mxu0 %v4321_v36  ;;  %v4338_v36 = vld [vmem:[#allocation2 + $0x480] sm:$0xff]  }
0x192f   :  { %4104 = vmatprep.subr.bf16.mxu0 %v4382_v0 }
0x19e4   :  { %v2419_v38 = vpop.f32.mrb[56].mxu0 }
0x19e5   :  { %v2420_v39 = vadd.f32 %v3391_v37, %v2419_v38  ;;  %v4056_v40 = vpop.f32.mrb[57].mxu0  ;;  %v4340_v38 = vld [vmem:[#allocation2 + $0x490] sm:$0xff]  }
0x19e6   :  { %v2422_v41 = vpop.f32.mrb[58].mxu0  ;;  %v4342_v40 = vld [vmem:[#allocation2 + $0x4a0] sm:$0xff]  }
0x19e7   :  { %v2423_v42 = vadd.f32 %v3391_v37, %v2422_v41  ;;  %v4057_v43 = vpop.f32.mrb[59].mxu0  ;;  %v2426_v44 = vmax.f32 %v2420_v39, 0.0  ;;  %v4339_v37 = vld [vmem:[#allocation2 + $0x488] sm:$0xff]   ;;  %v4341_v39 = vld [vmem:[#allocation2 + $0x498] sm:$0xff]  }
0x19e8   :  { %v4343_v41 = vld [vmem:[#allocation2 + $0x4a8] sm:$0xff]   ;;  %v4345_v43 = vld [vmem:[#allocation2 + $0x4b8] sm:$0xff]  }
0x19e9   :  { %v2427_v45 = vmax.f32 %v2423_v42, 0.0  ;;  %v4344_v42 = vld [vmem:[#allocation2 + $0x4b0] sm:$0xff]  }
0x19eb   :  { %v2428_v47 = vpack.c.bf16 %v2427_v45, %v2426_v44  ;;  %v3424_v44 = vld [vmem:[%s4806_s3 + $0x11] ss:$0 sm:$0xff] }
0x19ed   :  { %4075 = vmatmul.mubr.bf16.vlgmr.msra.gmra.mrb[60].mxu0 %v2428_v47 }
0x19ee   :  { %4106 = vmatprep.mubr.msk.bf16.mxu0 %vm4383_vm0, %v4382_v0 }
0x1ac0   :  { %v2528_v48 = vpop.f32.mrb[60].mxu0 }
0x1ac1   :  { %v4076_v49 = vpop.f32.mrb[61].mxu0 }
0x1ac2   :  { %v2531_v50 = vpop.f32.mrb[62].mxu0 }
0x1ac3   :  { %v2535_v51 = vpack.c.bf16 %v2531_v50, %v2528_v48  ;;  %v4077_v52 = vpop.f32.mrb[63].mxu0 }
0x1ac5   :  { %4079 = vmatpush3.bf16.msra.mxu1 %v2535_v51 }
0x1ac6   :  { %4084 = vmatprep.subr.bf16.mxu1 %v4382_v0 }
0x1ac8   :  { %4081 = vmatmul.mubr.msk.bf16.vlgmr.msra.gmra.mrb[60].mxu1 %vm155_vm1, %v4668_v46 }
0x1ac9   :  { %4085 = vmatpush3.bf16.msra.mxu1 %v4322_v53  ;;  %4100 = vmatprep.mubr.msk.bf16.mxu1 %vm4383_vm0, %v4382_v0 }
0x1aca   :  { %4086 = vmatprep.subr.bf16.mxu1 %v4382_v0 }
0x1acd   :  { %4087 = vmatpush3.bf16.msra.mxu1 %v4323_v54 }
0x1ace   :  { %4088 = vmatprep.subr.bf16.mxu1 %v4382_v0 }
0x1ad1   :  { %4089 = vmatpush3.bf16.msra.mxu1 %v4324_v55 }
0x1ad2   :  { %4090 = vmatprep.subr.bf16.mxu1 %v4382_v0 }
0x1ad5   :  { %4091 = vmatpush3.bf16.msra.mxu1 %v4325_v56 }
0x1ad6   :  { %4092 = vmatprep.subr.bf16.mxu1 %v4382_v0 }
0x1ad9   :  { %4093 = vmatpush3.bf16.msra.mxu1 %v4326_v57 }
0x1ada   :  { %4094 = vmatprep.subr.bf16.mxu1 %v4382_v0 }
0x1add   :  { %4095 = vmatpush3.bf16.msra.mxu1 %v4327_v58 }
0x1ade   :  { %4096 = vmatprep.subr.bf16.mxu1 %v4382_v0 }
0x1ae1   :  { %4097 = vmatpush3.bf16.msra.mxu1 %v4328_v59 }
0x1ae2   :  { %4098 = vmatprep.subr.bf16.mxu1 %v4382_v0 }
0x1ae5   :  { %4099 = vmatpush3.bf16.msra.mxu1 %v4329_v60  ;;  %v4346_v60 = vld [vmem:[#allocation2 + $0x4c0] sm:$0xff]  }
0x1ae6   :  { %4130 = vmatprep.subr.bf16.mxu1 %v4382_v0 }
0x1b9b   :  { %v2578_v62 = vpop.f32.mrb[60].mxu1 }
0x1b9c   :  { %v2579_v63 = vadd.f32 %v3402_v61, %v2578_v62  ;;  %v4082_v1 = vpop.f32.mrb[61].mxu1  ;;  %v4348_v62 = vld [vmem:[#allocation2 + $0x4d0] sm:$0xff]  }
0x1b9d   :  { %v2581_v2 = vpop.f32.mrb[62].mxu1  ;;  %v4350_v1 = vld [vmem:[#allocation2 + $0x4e0] sm:$0xff]  }
0x1b9e   :  { %v2582_v3 = vadd.f32 %v3402_v61, %v2581_v2  ;;  %v4083_v4 = vpop.f32.mrb[63].mxu1  ;;  %v2585_v5 = vmax.f32 %v2579_v63, 0.0  ;;  %v4347_v61 = vld [vmem:[#allocation2 + $0x4c8] sm:$0xff]   ;;  %v4349_v63 = vld [vmem:[#allocation2 + $0x4d8] sm:$0xff]  }
0x1b9f   :  { %v4351_v2 = vld [vmem:[#allocation2 + $0x4e8] sm:$0xff]   ;;  %v4353_v4 = vld [vmem:[#allocation2 + $0x4f8] sm:$0xff]  }
0x1ba0   :  { %v2586_v6 = vmax.f32 %v2582_v3, 0.0  ;;  %v4352_v3 = vld [vmem:[#allocation2 + $0x4f0] sm:$0xff]  }
0x1ba2   :  { %v2587_v7 = vpack.c.bf16 %v2586_v6, %v2585_v5  ;;  %v3435_v5 = vld [vmem:[%s4806_s3 + $0x12] ss:$0 sm:$0xff] }
0x1ba4   :  { %4101 = vmatmul.mubr.bf16.vlgmr.msra.gmra.mrb[64].mxu1 %v2587_v7 }
0x1ba5   :  { %4132 = vmatprep.mubr.msk.bf16.mxu1 %vm4383_vm0, %v4382_v0 }
0x1c77   :  { %v2687_v8 = vpop.f32.mrb[64].mxu1 }
0x1c78   :  { %v4102_v9 = vpop.f32.mrb[65].mxu1 }
0x1c79   :  { %v2690_v10 = vpop.f32.mrb[66].mxu1 }
0x1c7a   :  { %v2694_v11 = vpack.c.bf16 %v2690_v10, %v2687_v8  ;;  %v4103_v12 = vpop.f32.mrb[67].mxu1 }
0x1c7c   :  { %4105 = vmatpush3.bf16.msra.mxu0 %v2694_v11 }
0x1c7d   :  { %4110 = vmatprep.subr.bf16.mxu0 %v4382_v0 }
0x1c7f   :  { %4107 = vmatmul.mubr.msk.bf16.vlgmr.msra.gmra.mrb[64].mxu0 %vm155_vm1, %v4668_v46 }
0x1c80   :  { %4111 = vmatpush3.bf16.msra.mxu0 %v4330_v13  ;;  %4126 = vmatprep.mubr.msk.bf16.mxu0 %vm4383_vm0, %v4382_v0 }
0x1c81   :  { %4112 = vmatprep.subr.bf16.mxu0 %v4382_v0 }
0x1c84   :  { %4113 = vmatpush3.bf16.msra.mxu0 %v4331_v14 }
0x1c85   :  { %4114 = vmatprep.subr.bf16.mxu0 %v4382_v0 }
0x1c88   :  { %4115 = vmatpush3.bf16.msra.mxu0 %v4332_v15 }
0x1c89   :  { %4116 = vmatprep.subr.bf16.mxu0 %v4382_v0 }
0x1c8c   :  { %4117 = vmatpush3.bf16.msra.mxu0 %v4333_v16 }
0x1c8d   :  { %4118 = vmatprep.subr.bf16.mxu0 %v4382_v0 }
0x1c90   :  { %4119 = vmatpush3.bf16.msra.mxu0 %v4334_v18 }
0x1c91   :  { %4120 = vmatprep.subr.bf16.mxu0 %v4382_v0 }
0x1c94   :  { %4121 = vmatpush3.bf16.msra.mxu0 %v4335_v19 }
0x1c95   :  { %4122 = vmatprep.subr.bf16.mxu0 %v4382_v0 }
0x1c98   :  { %4123 = vmatpush3.bf16.msra.mxu0 %v4336_v20  ;;  %v3446_v20 = vld [vmem:[%s4806_s3 + $0x13] ss:$0 sm:$0xff] }
0x1c99   :  { %4124 = vmatprep.subr.bf16.mxu0 %v4382_v0 }
0x1c9c   :  { %4125 = vmatpush3.bf16.msra.mxu0 %v4337_v21 }
0x1c9d   :  { %4156 = vmatprep.subr.bf16.mxu0 %v4382_v0 }
0x1d52   :  { %v2737_v23 = vpop.f32.mrb[64].mxu0 }
0x1d53   :  { %v2738_v24 = vadd.f32 %v3413_v22, %v2737_v23  ;;  %v4108_v25 = vpop.f32.mrb[65].mxu0 }
0x1d54   :  { %v2740_v26 = vpop.f32.mrb[66].mxu0 }
0x1d55   :  { %v2741_v27 = vadd.f32 %v3413_v22, %v2740_v26  ;;  %v4109_v17 = vpop.f32.mrb[67].mxu0  ;;  %v2744_v28 = vmax.f32 %v2738_v24, 0.0 }
0x1d57   :  { %v2745_v29 = vmax.f32 %v2741_v27, 0.0 }
0x1d59   :  { %v2746_v30 = vpack.c.bf16 %v2745_v29, %v2744_v28 }
0x1d5b   :  { %4127 = vmatmul.mubr.bf16.vlgmr.msra.gmra.mrb[68].mxu0 %v2746_v30 }
0x1d5c   :  { %4158 = vmatprep.mubr.msk.bf16.mxu0 %vm4383_vm0, %v4382_v0 }
0x1e2e   :  { %v2846_v31 = vpop.f32.mrb[68].mxu0 }
0x1e2f   :  { %v4128_v32 = vpop.f32.mrb[69].mxu0 }
0x1e30   :  { %v2849_v33 = vpop.f32.mrb[70].mxu0 }
0x1e31   :  { %v2853_v34 = vpack.c.bf16 %v2849_v33, %v2846_v31  ;;  %v4129_v35 = vpop.f32.mrb[71].mxu0 }
0x1e33   :  { %4131 = vmatpush3.bf16.msra.mxu1 %v2853_v34 }
0x1e34   :  { %4136 = vmatprep.subr.bf16.mxu1 %v4382_v0 }
0x1e36   :  { %4133 = vmatmul.mubr.msk.bf16.vlgmr.msra.gmra.mrb[68].mxu1 %vm155_vm1, %v4668_v46 }
0x1e37   :  { %4137 = vmatpush3.bf16.msra.mxu1 %v4338_v36  ;;  %4152 = vmatprep.mubr.msk.bf16.mxu1 %vm4383_vm0, %v4382_v0 }
0x1e38   :  { %4138 = vmatprep.subr.bf16.mxu1 %v4382_v0 }
0x1e3b   :  { %4139 = vmatpush3.bf16.msra.mxu1 %v4339_v37 }
0x1e3c   :  { %4140 = vmatprep.subr.bf16.mxu1 %v4382_v0 }
0x1e3f   :  { %4141 = vmatpush3.bf16.msra.mxu1 %v4340_v38 }
0x1e40   :  { %4142 = vmatprep.subr.bf16.mxu1 %v4382_v0 }
0x1e43   :  { %4143 = vmatpush3.bf16.msra.mxu1 %v4341_v39 }
0x1e44   :  { %4144 = vmatprep.subr.bf16.mxu1 %v4382_v0 }
0x1e47   :  { %4145 = vmatpush3.bf16.msra.mxu1 %v4342_v40 }
0x1e48   :  { %4146 = vmatprep.subr.bf16.mxu1 %v4382_v0 }
0x1e4b   :  { %4147 = vmatpush3.bf16.msra.mxu1 %v4343_v41 }
0x1e4c   :  { %4148 = vmatprep.subr.bf16.mxu1 %v4382_v0 }
0x1e4f   :  { %4149 = vmatpush3.bf16.msra.mxu1 %v4344_v42 }
0x1e50   :  { %4150 = vmatprep.subr.bf16.mxu1 %v4382_v0 }
0x1e53   :  { %4151 = vmatpush3.bf16.msra.mxu1 %v4345_v43 }
0x1e54   :  { %4182 = vmatprep.subr.bf16.mxu1 %v4382_v0 }
0x1f09   :  { %v2896_v45 = vpop.f32.mrb[68].mxu1 }
0x1f0a   :  { %v2897_v47 = vadd.f32 %v3424_v44, %v2896_v45  ;;  %v4134_v48 = vpop.f32.mrb[69].mxu1 }
0x1f0b   :  { %v2899_v49 = vpop.f32.mrb[70].mxu1 }
0x1f0c   :  { %v2900_v50 = vadd.f32 %v3424_v44, %v2899_v49  ;;  %v4135_v51 = vpop.f32.mrb[71].mxu1  ;;  %v2903_v52 = vmax.f32 %v2897_v47, 0.0 }
0x1f0e   :  { %v2904_v53 = vmax.f32 %v2900_v50, 0.0 }
0x1f10   :  { %v2905_v54 = vpack.c.bf16 %v2904_v53, %v2903_v52 }
0x1f12   :  { %4153 = vmatmul.mubr.bf16.vlgmr.msra.gmra.mrb[72].mxu1 %v2905_v54 }
0x1f13   :  { %4184 = vmatprep.mubr.msk.bf16.mxu1 %vm4383_vm0, %v4382_v0 }
0x1fe5   :  { %v3005_v55 = vpop.f32.mrb[72].mxu1 }
0x1fe6   :  { %v4154_v56 = vpop.f32.mrb[73].mxu1 }
0x1fe7   :  { %v3008_v57 = vpop.f32.mrb[74].mxu1 }
0x1fe8   :  { %v3012_v58 = vpack.c.bf16 %v3008_v57, %v3005_v55  ;;  %v4155_v59 = vpop.f32.mrb[75].mxu1 }
0x1fea   :  { %4157 = vmatpush3.bf16.msra.mxu0 %v3012_v58 }
0x1feb   :  { %4162 = vmatprep.subr.bf16.mxu0 %v4382_v0 }
0x1fed   :  { %4159 = vmatmul.mubr.msk.bf16.vlgmr.msra.gmra.mrb[72].mxu0 %vm155_vm1, %v4668_v46 }
0x1fee   :  { %4163 = vmatpush3.bf16.msra.mxu0 %v4346_v60  ;;  %4178 = vmatprep.mubr.msk.bf16.mxu0 %vm4383_vm0, %v4382_v0 }
0x1fef   :  { %4164 = vmatprep.subr.bf16.mxu0 %v4382_v0 }
0x1ff2   :  { %4165 = vmatpush3.bf16.msra.mxu0 %v4347_v61 }
0x1ff3   :  { %4166 = vmatprep.subr.bf16.mxu0 %v4382_v0 }
0x1ff6   :  { %4167 = vmatpush3.bf16.msra.mxu0 %v4348_v62 }
0x1ff7   :  { %4168 = vmatprep.subr.bf16.mxu0 %v4382_v0 }
0x1ffa   :  { %4169 = vmatpush3.bf16.msra.mxu0 %v4349_v63 }
0x1ffb   :  { %4170 = vmatprep.subr.bf16.mxu0 %v4382_v0 }
0x1ffe   :  { %4171 = vmatpush3.bf16.msra.mxu0 %v4350_v1 }
0x1fff   :  { %4172 = vmatprep.subr.bf16.mxu0 %v4382_v0 }
0x2002   :  { %4173 = vmatpush3.bf16.msra.mxu0 %v4351_v2 }
0x2003   :  { %4174 = vmatprep.subr.bf16.mxu0 %v4382_v0 }
0x2006   :  { %4175 = vmatpush3.bf16.msra.mxu0 %v4352_v3 }
0x2007   :  { %4176 = vmatprep.subr.bf16.mxu0 %v4382_v0 }
0x200a   :  { %4177 = vmatpush3.bf16.msra.mxu0 %v4353_v4 }
0x20c0   :  { %v3055_v6 = vpop.f32.mrb[72].mxu0 }
0x20c1   :  { %v3056_v7 = vadd.f32 %v3435_v5, %v3055_v6  ;;  %v4160_v8 = vpop.f32.mrb[73].mxu0 }
0x20c2   :  { %v3058_v9 = vpop.f32.mrb[74].mxu0 }
0x20c3   :  { %v3059_v10 = vadd.f32 %v3435_v5, %v3058_v9  ;;  %v4161_v11 = vpop.f32.mrb[75].mxu0  ;;  %v3062_v12 = vmax.f32 %v3056_v7, 0.0 }
0x20c5   :  { %v3063_v13 = vmax.f32 %v3059_v10, 0.0 }
0x20c7   :  { %v3064_v14 = vpack.c.bf16 %v3063_v13, %v3062_v12 }
0x20c9   :  { %4179 = vmatmul.mubr.bf16.vlgmr.msra.gmra.mrb[76].mxu0 %v3064_v14 }
0x219c   :  { %v3164_v15 = vpop.f32.mrb[76].mxu0 }
0x219d   :  { %v4180_v16 = vpop.f32.mrb[77].mxu0 }
0x219e   :  { %v3167_v18 = vpop.f32.mrb[78].mxu0 }
0x219f   :  { %v3171_v0 = vpack.c.bf16 %v3167_v18, %v3164_v15  ;;  %v4181_v19 = vpop.f32.mrb[79].mxu0 }
0x21a1   :  { %4183 = vmatpush3.bf16.msra.mxu1 %v3171_v0 }
0x21a4   :  { %4185 = vmatmul.mubr.msk.bf16.vlgmr.msra.gmra.mrb[76].mxu1 %vm155_vm1, %v4668_v46 }
0x2277   :  { %v3214_v21 = vpop.f32.mrb[76].mxu1 }
0x2278   :  { %v3215_v22 = vadd.f32 %v3446_v20, %v3214_v21  ;;  %v4186_v23 = vpop.f32.mrb[77].mxu1 }
0x2279   :  { %v3217_v24 = vpop.f32.mrb[78].mxu1 }
0x227a   :  { %3221 = vst [vmem:[%s4807_s4] sm:$0xff] %v3215_v22  ;;  %v3218_v25 = vadd.f32 %v3446_v20, %v3217_v24  ;;  %v4187_v26 = vpop.f32.mrb[79].mxu1 }
0x227c   :  { %3222 = vst [vmem:[%s4807_s4 + $0x8] sm:$0xff] %v3218_v25 }
0x227d   :  { %3227 = vsyncpa [#allocation3], 1 }

</bundles_post_ra>
